<compile_context>
chip_gen: v6e
topology: v6e:2x2x1
jax: 0.10.0
libtpu: 0.0.40
codegen_flags: <defaults>
</compile_context>

<pallas_src>
import functools
import math

import jax
import jax.numpy as jnp
from jax.experimental import pallas as pl
from jax.experimental.pallas import tpu as pltpu

LANE = 128  # channel padding target (lane-dense layout / full MXU columns)


def _round_up(x, m):
    return (x + m - 1) // m * m


def choose_tiles(num_nodes):
    """(tm, tk) for the streamed A_hat tile; targets ~1-4 MiB bf16 blocks."""
    if num_nodes <= 256:
        return (256, 256)       # 128 KiB (tiny graphs; single grid step)
    if num_nodes <= 512:
        return (512, 512)       # 512 KiB
    if num_nodes <= 2048:
        return (512, 1024)      # 1 MiB
    return (1024, 2048)         # 4 MiB (v7x-sized; even row-tile count for megacore)


@functools.lru_cache(maxsize=1)
def _vmem_limit_bytes():
    # v5e/v6e: 128 MiB VMEM per core, v7x: 64 MiB.  Leave ~8 MiB headroom and
    # never exceed ~110 MiB.  Falls back to the conservative 64 MiB budget.
    cap = 64 * 1024 * 1024
    try:
        info = pltpu.get_tpu_info()
        cap = int(getattr(info, "vmem_capacity_bytes", cap))
    except Exception:
        pass
    return min(cap - 8 * 1024 * 1024, 110 * 1024 * 1024)


# ----------------------------------------------------------------------------
# Kernel A: aggregate-then-transform (layers with Cin < Cout), fused with the
# NEXT layer's feature transform:
#   out = relu( (sum_k A[r,k] @ H[k]) @ W + b ) @ W_next
# ----------------------------------------------------------------------------
def _gcn_agg_transform_kernel(a_ref, h_ref, w_ref, b_ref, wn_ref,
                              out_ref, acc_ref):
    k = pl.program_id(1)

    @pl.when(k == 0)
    def _init():
        acc_ref[...] = jnp.zeros_like(acc_ref)

    # (tm, tk) bf16 @ (tk, LANE) bf16 -> f32 accumulation.
    acc_ref[...] += jnp.dot(a_ref[...], h_ref[...],
                            preferred_element_type=jnp.float32)

    @pl.when(k == pl.num_programs(1) - 1)
    def _finalize():
        y = jnp.dot(acc_ref[...].astype(jnp.bfloat16), w_ref[...],
                    preferred_element_type=jnp.float32)
        y = jnp.maximum(y + b_ref[...], 0.0)                 # bias + ReLU in f32
        g = jnp.dot(y.astype(jnp.bfloat16), wn_ref[...],
                    preferred_element_type=jnp.float32)
        out_ref[...] = g.astype(out_ref.dtype)


# ----------------------------------------------------------------------------
# Kernel B: aggregate-only (layers with Cout <= Cin; their H@W was fused into
# the previous call's epilogue):
#   out = (sum_k A[r,k] @ G[k]) + b
# ----------------------------------------------------------------------------
def _gcn_agg_kernel(a_ref, g_ref, b_ref, out_ref, acc_ref):
    k = pl.program_id(1)

    @pl.when(k == 0)
    def _init():
        acc_ref[...] = jnp.zeros_like(acc_ref)

    acc_ref[...] += jnp.dot(a_ref[...], g_ref[...],
                            preferred_element_type=jnp.float32)

    @pl.when(k == pl.num_programs(1) - 1)
    def _finalize():
        out_ref[...] = (acc_ref[...] + b_ref[...]).astype(out_ref.dtype)


# ----------------------------------------------------------------------------
# Tiled pallas_call wrapper for one (possibly fused) layer.
# ----------------------------------------------------------------------------
def _tiled_gcn_call(kernel_fn, a, h, small_inputs, out_dtype, *, tm, tk,
                    flops, bytes_accessed):
    n_pad = a.shape[0]
    grid = (n_pad // tm, n_pad // tk)

    in_specs = [
        pl.BlockSpec((tm, tk), lambda r, k: (r, k)),      # streamed A tile
        pl.BlockSpec((tk, LANE), lambda r, k: (k, 0)),    # streamed H/G block
    ]
    # Small constant operands (weights/biases): full-array blocks, constant
    # index_map -> DMA'd once; tiny (<=32 KiB each) so double-buffering is fine.
    in_specs += [pl.BlockSpec(xi.shape, lambda r, k: (0, 0)) for xi in small_inputs]
    out_specs = pl.BlockSpec((tm, LANE), lambda r, k: (r, 0))

    return pl.pallas_call(
        kernel_fn,
        out_shape=jax.ShapeDtypeStruct((n_pad, LANE), out_dtype),
        grid_spec=pltpu.PrefetchScalarGridSpec(
            num_scalar_prefetch=0,
            grid=grid,
            in_specs=in_specs,
            out_specs=out_specs,
            scratch_shapes=[pltpu.VMEM((tm, LANE), jnp.float32)],
        ),
        compiler_params=pltpu.CompilerParams(
            dimension_semantics=("parallel", "arbitrary"),   # megacore rows
            vmem_limit_bytes=_vmem_limit_bytes(),
        ),
        cost_estimate=pl.CostEstimate(
            flops=int(flops), transcendentals=0,
            bytes_accessed=int(bytes_accessed)),
    )(a, h, *small_inputs)


# ----------------------------------------------------------------------------
# Per-graph preprocessing (hoisted out of the forward pass).
# ----------------------------------------------------------------------------
def preprocess_adjacency(adj_hat, tiles):
    """Pad A_hat to tile-aligned (n_pad, n_pad) and cast to bf16, ONCE per graph.

    Re-doing this pad+cast every forward call reads n^2 f32 and writes n_pad^2
    bf16, ~1.5x one layer's A traffic."""
    tm, tk = tiles
    n = adj_hat.shape[0]
    align = math.lcm(tm, tk)
    n_pad = _round_up(max(n, align), align)
    return jnp.pad(adj_hat, ((0, n_pad - n), (0, n_pad - n))).astype(jnp.bfloat16)


# ----------------------------------------------------------------------------
# Full forward pass.
# ----------------------------------------------------------------------------
def gnn_autoencoder_pallas(a_bf, x, params, *, tiles):
    """a_bf: pre-padded bf16 A_hat from preprocess_adjacency.
    params = ((w1,b1),(w2,b2),(w3,b3),(w4,b4)) with w_l:(Cin_l,Cout_l)."""
    tm, tk = tiles
    n, cin = x.shape
    n_pad = a_bf.shape[0]
    assert n_pad % tm == 0 and n_pad % tk == 0 and n_pad >= n
    (w1, b1), (w2, b2), (w3, b3), (w4, b4) = params
    assert max(w.shape[0] for w, _ in params) <= LANE
    assert max(w.shape[1] for w, _ in params) <= LANE

    # Lane-dense / tile-aligned zero padding of the (cheap) feature inputs.
    x_bf = jnp.pad(x, ((0, n_pad - n), (0, LANE - cin))).astype(jnp.bfloat16)

    def pad_w(w):
        return jnp.pad(w, ((0, LANE - w.shape[0]),
                           (0, LANE - w.shape[1]))).astype(jnp.bfloat16)

    def pad_b(b):
        return jnp.pad(b, (0, LANE - b.shape[0])).reshape(1, LANE)  # stays f32

    w1p, w2p, w3p, w4p = pad_w(w1), pad_w(w2), pad_w(w3), pad_w(w4)
    b1p, b2p, b3p, b4p = pad_b(b1), pad_b(b2), pad_b(b3), pad_b(b4)

    agg_flops = 2 * n_pad * n_pad * LANE
    epi_flops = 2 * 2 * n_pad * LANE * LANE
    a_bytes = n_pad * n_pad * 2
    h_bytes = (n_pad // tm) * n_pad * LANE * 2   # streamed H re-read per row tile
    o_bf16 = n_pad * LANE * 2

    # Layer 1 (Cin<Cout): aggregate first; fuse layer-2 transform:
    #   g2 = relu((A @ x) @ W1 + b1) @ W2
    g2 = _tiled_gcn_call(_gcn_agg_transform_kernel, a_bf, x_bf,
                         (w1p, b1p, w2p), jnp.bfloat16, tm=tm, tk=tk,
                         flops=agg_flops + epi_flops,
                         bytes_accessed=a_bytes + h_bytes + o_bf16)

    # Layer 2 (Cout<=Cin): pure aggregation:  h2 = A @ g2 + b2
    h2 = _tiled_gcn_call(_gcn_agg_kernel, a_bf, g2, (b2p,), jnp.bfloat16,
                         tm=tm, tk=tk,
                         flops=agg_flops,
                         bytes_accessed=a_bytes + h_bytes + o_bf16)

    # Layer 3 (Cin<Cout): aggregate first; fuse layer-4 transform:
    #   g4 = relu((A @ h2) @ W3 + b3) @ W4
    g4 = _tiled_gcn_call(_gcn_agg_transform_kernel, a_bf, h2,
                         (w3p, b3p, w4p), jnp.bfloat16, tm=tm, tk=tk,
                         flops=agg_flops + epi_flops,
                         bytes_accessed=a_bytes + h_bytes + o_bf16)

    # Layer 4 (Cout<=Cin): pure aggregation:  out = A @ g4 + b4
    out_p = _tiled_gcn_call(_gcn_agg_kernel, a_bf, g4, (b4p,), jnp.float32,
                            tm=tm, tk=tk,
                            flops=agg_flops,
                            bytes_accessed=a_bytes + h_bytes + n_pad * LANE * 4)

    return out_p[:n, :cin]


# ----------------------------------------------------------------------------
# Plain-JAX glue: dense normalized adjacency from edge_index (PyG gcn_norm:
# add self loops, symmetric D^-1/2 (A+I) D^-1/2).
# ----------------------------------------------------------------------------
def build_normalized_adjacency(edge_index, num_nodes, edge_weight=None):
    src, dst = edge_index[0], edge_index[1]
    if edge_weight is None:
        edge_weight = jnp.ones(src.shape, dtype=jnp.float32)
    adj = jnp.zeros((num_nodes, num_nodes), jnp.float32)
    adj = adj.at[dst, src].add(edge_weight)             # messages src -> dst
    adj = adj + jnp.eye(num_nodes, dtype=jnp.float32)   # self loops
    deg = adj.sum(axis=1)
    dis = jnp.where(deg > 0, 1.0 / jnp.sqrt(deg), 0.0)
    return dis[:, None] * adj * dis[None, :]


def init_gcn_params(key, in_channels, hidden_channels, embedding_dim):
    dims = [(in_channels, hidden_channels),
            (hidden_channels, embedding_dim),
            (embedding_dim, hidden_channels),
            (hidden_channels, in_channels)]
    params = []
    for i, (din, dout) in enumerate(dims):
        kw = jax.random.fold_in(key, i)
        scale = jnp.sqrt(6.0 / (din + dout))  # glorot-uniform style
        w = jax.random.uniform(kw, (din, dout), jnp.float32, -scale, scale)
        b = jnp.zeros((dout,), jnp.float32)
        params.append((w, b))
    return params


# Pure-JAX references.
def gnn_autoencoder_ref_f32(adj_hat, x, params):
    h = x
    for i, (w, b) in enumerate(params):
        h = adj_hat @ (h @ w) + b[None, :]
        if i in (0, 2):
            h = jnp.maximum(h, 0.0)
    return h


def _bdot(a, b):  # bf16 operands, f32 accumulation (matches kernel precision)
    return jnp.dot(a.astype(jnp.bfloat16), b.astype(jnp.bfloat16),
                   preferred_element_type=jnp.float32)


def gnn_autoencoder_ref_mixed(adj_hat, x, params):
    (w1, b1), (w2, b2), (w3, b3), (w4, b4) = params
    h1 = jnp.maximum(_bdot(_bdot(adj_hat, x), w1) + b1[None, :], 0.0)
    g2 = _bdot(h1, w2)
    h2 = _bdot(adj_hat, g2) + b2[None, :]
    h3 = jnp.maximum(_bdot(_bdot(adj_hat, h2), w3) + b3[None, :], 0.0)
    g4 = _bdot(h3, w4)
    return _bdot(adj_hat, g4) + b4[None, :]


def _run_and_check(key, *, num_nodes, in_channels, hidden_channels,
                   embedding_dim, num_edges, tiles=None):
    k_x, k_e, k_p = jax.random.split(key, 3)
    x = jax.random.normal(k_x, (num_nodes, in_channels), jnp.float32)
    edge_index = jax.random.randint(k_e, (2, num_edges), 0, num_nodes,
                                    dtype=jnp.int32)

    adj_hat = build_normalized_adjacency(edge_index, num_nodes)
    params = init_gcn_params(k_p, in_channels, hidden_channels, embedding_dim)

    if tiles is None:
        tiles = choose_tiles(num_nodes)
    a_bf = preprocess_adjacency(adj_hat, tiles)       # once per graph (hoisted)

    fwd = jax.jit(functools.partial(gnn_autoencoder_pallas, tiles=tiles))
    out = jax.block_until_ready(fwd(a_bf, x, params))
    assert out.shape == (num_nodes, in_channels)

    # Tight check vs. precision-matched (bf16 operands, f32 accum) reference.
    ref_mixed = gnn_autoencoder_ref_mixed(adj_hat, x, params)
    assert jnp.allclose(out, ref_mixed, atol=1e-2, rtol=1e-2)

    # Looser sanity check vs. full-f32 reference (bf16 MXU operands in kernel).
    ref_f32 = gnn_autoencoder_ref_f32(adj_hat, x, params)
    assert jnp.allclose(out, ref_f32, atol=2e-1, rtol=2e-1)
    return out


if __name__ == "__main__":
    key = jax.random.PRNGKey(0)

    # Small, module-consistent shapes (correctness only; the large streamed-A
    # tiling matters for graphs with N >= ~1024).
    _run_and_check(jax.random.fold_in(key, 0),
                   num_nodes=16, in_channels=8, hidden_channels=32,
                   embedding_dim=16, num_edges=40)

    # Multi-tile path: exercises the k-accumulation grid and parallel row tiles.
    _run_and_check(jax.random.fold_in(key, 1),
                   num_nodes=320, in_channels=8, hidden_channels=32,
                   embedding_dim=16, num_edges=960, tiles=(128, 128))

    print("KERNEL_OK")
</pallas_src>

<mosaic_0001>
module attributes {stable_mosaic.version = 11 : i64} {
  func.func @_gcn_agg_transform_kernel(%arg0: i32, %arg1: i32, %arg2: memref<256x256xbf16, #tpu.memory_space<vmem>>, %arg3: memref<256x128xbf16, #tpu.memory_space<vmem>>, %arg4: memref<128x128xbf16, #tpu.memory_space<vmem>>, %arg5: memref<1x128xf32, #tpu.memory_space<vmem>>, %arg6: memref<128x128xbf16, #tpu.memory_space<vmem>>, %arg7: memref<256x128xbf16, #tpu.memory_space<vmem>>, %arg8: memref<256x128xf32, #tpu.memory_space<vmem>>) attributes {dimension_semantics = [#tpu.dimension_semantics<parallel>, #tpu.dimension_semantics<arbitrary>], iteration_bounds = array<i64: 1, 1>, scalar_prefetch = 0 : i64, scratch_operands = 1 : i64, tpu.core_type = #tpu.core_type<tc>, window_params = [{transform_indices = @transform_0, window_bounds = array<i64: 256, 256>}, {transform_indices = @transform_1, window_bounds = array<i64: 256, 128>}, {pipeline_mode = #tpu.pipeline_mode<synchronous>, transform_indices = @transform_2, window_bounds = array<i64: 128, 128>}, {pipeline_mode = #tpu.pipeline_mode<synchronous>, transform_indices = @transform_3, window_bounds = array<i64: 1, 128>}, {pipeline_mode = #tpu.pipeline_mode<synchronous>, transform_indices = @transform_4, window_bounds = array<i64: 128, 128>}, {transform_indices = @transform_5, window_bounds = array<i64: 256, 128>}]} {
    %c0_i32 = arith.constant 0 : i32
    %0 = arith.cmpi eq, %arg1, %c0_i32 : i32
    %1 = arith.extui %0 : i1 to i32
    %c0_i32_0 = arith.constant 0 : i32
    %2 = arith.cmpi ne, %1, %c0_i32_0 : i32
    scf.if %2 {
      %cst_10 = arith.constant 0.000000e+00 : f32
      %12 = vector.broadcast %cst_10 : f32 to vector<256x128xf32>
      %c0_11 = arith.constant 0 : index
      %c0_12 = arith.constant 0 : index
      %13 = vector.load %arg8[%c0_11, %c0_12] : memref<256x128xf32, #tpu.memory_space<vmem>>, vector<256x128xf32>
      tpu.vector_store %arg8[%c0_11, %c0_12], %12 {strides = array<i32>} : memref<256x128xf32, #tpu.memory_space<vmem>>, vector<256x128xf32>,
    } else {
    }
    %c0 = arith.constant 0 : index
    %c0_1 = arith.constant 0 : index
    %3 = vector.load %arg8[%c0, %c0_1] : memref<256x128xf32, #tpu.memory_space<vmem>>, vector<256x128xf32>
    %c0_2 = arith.constant 0 : index
    %c0_3 = arith.constant 0 : index
    %4 = vector.load %arg2[%c0_2, %c0_3] : memref<256x256xbf16, #tpu.memory_space<vmem>>, vector<256x256xbf16>
    %c0_4 = arith.constant 0 : index
    %c0_5 = arith.constant 0 : index
    %5 = vector.load %arg3[%c0_4, %c0_5] : memref<256x128xbf16, #tpu.memory_space<vmem>>, vector<256x128xbf16>
    %cst = arith.constant dense<0.000000e+00> : vector<256x128xf32>
    %6 = tpu.matmul %4, %5, %cst {dimension_numbers = #tpu.dot_dimension_numbers<[1], [0], [0], [1], [0, 0, 1, 1], [], []>} : vector<256x256xbf16>, vector<256x128xbf16>, vector<256x128xf32> -> vector<256x128xf32>
    %7 = arith.addf %3, %6 : vector<256x128xf32>
    %c0_6 = arith.constant 0 : index
    %c0_7 = arith.constant 0 : index
    %8 = vector.load %arg8[%c0_6, %c0_7] : memref<256x128xf32, #tpu.memory_space<vmem>>, vector<256x128xf32>
    tpu.vector_store %arg8[%c0_6, %c0_7], %7 {strides = array<i32>} : memref<256x128xf32, #tpu.memory_space<vmem>>, vector<256x128xf32>,
    %c0_i32_8 = arith.constant 0 : i32
    %9 = arith.cmpi eq, %arg1, %c0_i32_8 : i32
    %10 = arith.extui %9 : i1 to i32
    %c0_i32_9 = arith.constant 0 : i32
    %11 = arith.cmpi ne, %10, %c0_i32_9 : i32
    scf.if %11 {
      %c0_10 = arith.constant 0 : index
      %c0_11 = arith.constant 0 : index
      %12 = vector.load %arg8[%c0_10, %c0_11] : memref<256x128xf32, #tpu.memory_space<vmem>>, vector<256x128xf32>
      %13 = arith.truncf %12 : vector<256x128xf32> to vector<256x128xbf16>
      %c0_12 = arith.constant 0 : index
      %c0_13 = arith.constant 0 : index
      %14 = vector.load %arg4[%c0_12, %c0_13] : memref<128x128xbf16, #tpu.memory_space<vmem>>, vector<128x128xbf16>
      %cst_14 = arith.constant dense<0.000000e+00> : vector<256x128xf32>
      %15 = tpu.matmul %13, %14, %cst_14 {dimension_numbers = #tpu.dot_dimension_numbers<[1], [0], [0], [1], [0, 0, 1, 1], [], []>} : vector<256x128xbf16>, vector<128x128xbf16>, vector<256x128xf32> -> vector<256x128xf32>
      %c0_15 = arith.constant 0 : index
      %c0_16 = arith.constant 0 : index
      %16 = vector.load %arg5[%c0_15, %c0_16] : memref<1x128xf32, #tpu.memory_space<vmem>>, vector<1x128xf32>
      %17 = vector.broadcast %16 : vector<1x128xf32> to vector<256x128xf32>
      %18 = arith.addf %15, %17 : vector<256x128xf32>
      %cst_17 = arith.constant 0.000000e+00 : f32
      %19 = vector.broadcast %cst_17 : f32 to vector<256x128xf32>
      %20 = arith.maximumf %18, %19 : vector<256x128xf32>
      %21 = arith.truncf %20 : vector<256x128xf32> to vector<256x128xbf16>
      %c0_18 = arith.constant 0 : index
      %c0_19 = arith.constant 0 : index
      %22 = vector.load %arg6[%c0_18, %c0_19] : memref<128x128xbf16, #tpu.memory_space<vmem>>, vector<128x128xbf16>
      %cst_20 = arith.constant dense<0.000000e+00> : vector<256x128xf32>
      %23 = tpu.matmul %21, %22, %cst_20 {dimension_numbers = #tpu.dot_dimension_numbers<[1], [0], [0], [1], [0, 0, 1, 1], [], []>} : vector<256x128xbf16>, vector<128x128xbf16>, vector<256x128xf32> -> vector<256x128xf32>
      %24 = arith.truncf %23 : vector<256x128xf32> to vector<256x128xbf16>
      %c0_21 = arith.constant 0 : index
      %c0_22 = arith.constant 0 : index
      %25 = vector.load %arg7[%c0_21, %c0_22] : memref<256x128xbf16, #tpu.memory_space<vmem>>, vector<256x128xbf16>
      tpu.vector_store %arg7[%c0_21, %c0_22], %24 {strides = array<i32>} : memref<256x128xbf16, #tpu.memory_space<vmem>>, vector<256x128xbf16>,
    } else {
    }
    return
  }
  func.func @transform_0(%arg0: i32, %arg1: i32) -> (i32, i32) {
    %c0_i32 = arith.constant 0 : i32
    return %arg0, %arg1 : i32, i32
  }
  func.func @transform_1(%arg0: i32, %arg1: i32) -> (i32, i32) {
    %c0_i32 = arith.constant 0 : i32
    %c0_i32_0 = arith.constant 0 : i32
    return %arg1, %c0_i32 : i32, i32
  }
  func.func @transform_2(%arg0: i32, %arg1: i32) -> (i32, i32) {
    %c0_i32 = arith.constant 0 : i32
    %c0_i32_0 = arith.constant 0 : i32
    %c0_i32_1 = arith.constant 0 : i32
    return %c0_i32, %c0_i32_0 : i32, i32
  }
  func.func @transform_3(%arg0: i32, %arg1: i32) -> (i32, i32) {
    %c0_i32 = arith.constant 0 : i32
    %c0_i32_0 = arith.constant 0 : i32
    %c0_i32_1 = arith.constant 0 : i32
    return %c0_i32, %c0_i32_0 : i32, i32
  }
  func.func @transform_4(%arg0: i32, %arg1: i32) -> (i32, i32) {
    %c0_i32 = arith.constant 0 : i32
    %c0_i32_0 = arith.constant 0 : i32
    %c0_i32_1 = arith.constant 0 : i32
    return %c0_i32, %c0_i32_0 : i32, i32
  }
  func.func @transform_5(%arg0: i32, %arg1: i32) -> (i32, i32) {
    %c0_i32 = arith.constant 0 : i32
    %c0_i32_0 = arith.constant 0 : i32
    return %arg0, %c0_i32 : i32, i32
  }
}

module attributes {stable_mosaic.version = 11 : i64} {
  func.func @_gcn_agg_kernel(%arg0: i32, %arg1: i32, %arg2: memref<256x256xbf16, #tpu.memory_space<vmem>>, %arg3: memref<256x128xbf16, #tpu.memory_space<vmem>>, %arg4: memref<1x128xf32, #tpu.memory_space<vmem>>, %arg5: memref<256x128xbf16, #tpu.memory_space<vmem>>, %arg6: memref<256x128xf32, #tpu.memory_space<vmem>>) attributes {dimension_semantics = [#tpu.dimension_semantics<parallel>, #tpu.dimension_semantics<arbitrary>], iteration_bounds = array<i64: 1, 1>, scalar_prefetch = 0 : i64, scratch_operands = 1 : i64, tpu.core_type = #tpu.core_type<tc>, window_params = [{transform_indices = @transform_0, window_bounds = array<i64: 256, 256>}, {transform_indices = @transform_1, window_bounds = array<i64: 256, 128>}, {pipeline_mode = #tpu.pipeline_mode<synchronous>, transform_indices = @transform_2, window_bounds = array<i64: 1, 128>}, {transform_indices = @transform_3, window_bounds = array<i64: 256, 128>}]} {
    %c0_i32 = arith.constant 0 : i32
    %0 = arith.cmpi eq, %arg1, %c0_i32 : i32
    %1 = arith.extui %0 : i1 to i32
    %c0_i32_0 = arith.constant 0 : i32
    %2 = arith.cmpi ne, %1, %c0_i32_0 : i32
    scf.if %2 {
      %cst_10 = arith.constant 0.000000e+00 : f32
      %12 = vector.broadcast %cst_10 : f32 to vector<256x128xf32>
      %c0_11 = arith.constant 0 : index
      %c0_12 = arith.constant 0 : index
      %13 = vector.load %arg6[%c0_11, %c0_12] : memref<256x128xf32, #tpu.memory_space<vmem>>, vector<256x128xf32>
      tpu.vector_store %arg6[%c0_11, %c0_12], %12 {strides = array<i32>} : memref<256x128xf32, #tpu.memory_space<vmem>>, vector<256x128xf32>,
    } else {
    }
    %c0 = arith.constant 0 : index
    %c0_1 = arith.constant 0 : index
    %3 = vector.load %arg6[%c0, %c0_1] : memref<256x128xf32, #tpu.memory_space<vmem>>, vector<256x128xf32>
    %c0_2 = arith.constant 0 : index
    %c0_3 = arith.constant 0 : index
    %4 = vector.load %arg2[%c0_2, %c0_3] : memref<256x256xbf16, #tpu.memory_space<vmem>>, vector<256x256xbf16>
    %c0_4 = arith.constant 0 : index
    %c0_5 = arith.constant 0 : index
    %5 = vector.load %arg3[%c0_4, %c0_5] : memref<256x128xbf16, #tpu.memory_space<vmem>>, vector<256x128xbf16>
    %cst = arith.constant dense<0.000000e+00> : vector<256x128xf32>
    %6 = tpu.matmul %4, %5, %cst {dimension_numbers = #tpu.dot_dimension_numbers<[1], [0], [0], [1], [0, 0, 1, 1], [], []>} : vector<256x256xbf16>, vector<256x128xbf16>, vector<256x128xf32> -> vector<256x128xf32>
    %7 = arith.addf %3, %6 : vector<256x128xf32>
    %c0_6 = arith.constant 0 : index
    %c0_7 = arith.constant 0 : index
    %8 = vector.load %arg6[%c0_6, %c0_7] : memref<256x128xf32, #tpu.memory_space<vmem>>, vector<256x128xf32>
    tpu.vector_store %arg6[%c0_6, %c0_7], %7 {strides = array<i32>} : memref<256x128xf32, #tpu.memory_space<vmem>>, vector<256x128xf32>,
    %c0_i32_8 = arith.constant 0 : i32
    %9 = arith.cmpi eq, %arg1, %c0_i32_8 : i32
    %10 = arith.extui %9 : i1 to i32
    %c0_i32_9 = arith.constant 0 : i32
    %11 = arith.cmpi ne, %10, %c0_i32_9 : i32
    scf.if %11 {
      %c0_10 = arith.constant 0 : index
      %c0_11 = arith.constant 0 : index
      %12 = vector.load %arg6[%c0_10, %c0_11] : memref<256x128xf32, #tpu.memory_space<vmem>>, vector<256x128xf32>
      %c0_12 = arith.constant 0 : index
      %c0_13 = arith.constant 0 : index
      %13 = vector.load %arg4[%c0_12, %c0_13] : memref<1x128xf32, #tpu.memory_space<vmem>>, vector<1x128xf32>
      %14 = vector.broadcast %13 : vector<1x128xf32> to vector<256x128xf32>
      %15 = arith.addf %12, %14 : vector<256x128xf32>
      %16 = arith.truncf %15 : vector<256x128xf32> to vector<256x128xbf16>
      %c0_14 = arith.constant 0 : index
      %c0_15 = arith.constant 0 : index
      %17 = vector.load %arg5[%c0_14, %c0_15] : memref<256x128xbf16, #tpu.memory_space<vmem>>, vector<256x128xbf16>
      tpu.vector_store %arg5[%c0_14, %c0_15], %16 {strides = array<i32>} : memref<256x128xbf16, #tpu.memory_space<vmem>>, vector<256x128xbf16>,
    } else {
    }
    return
  }
  func.func @transform_0(%arg0: i32, %arg1: i32) -> (i32, i32) {
    %c0_i32 = arith.constant 0 : i32
    return %arg0, %arg1 : i32, i32
  }
  func.func @transform_1(%arg0: i32, %arg1: i32) -> (i32, i32) {
    %c0_i32 = arith.constant 0 : i32
    %c0_i32_0 = arith.constant 0 : i32
    return %arg1, %c0_i32 : i32, i32
  }
  func.func @transform_2(%arg0: i32, %arg1: i32) -> (i32, i32) {
    %c0_i32 = arith.constant 0 : i32
    %c0_i32_0 = arith.constant 0 : i32
    %c0_i32_1 = arith.constant 0 : i32
    return %c0_i32, %c0_i32_0 : i32, i32
  }
  func.func @transform_3(%arg0: i32, %arg1: i32) -> (i32, i32) {
    %c0_i32 = arith.constant 0 : i32
    %c0_i32_0 = arith.constant 0 : i32
    return %arg0, %c0_i32 : i32, i32
  }
}

module attributes {stable_mosaic.version = 11 : i64} {
  func.func @_gcn_agg_kernel(%arg0: i32, %arg1: i32, %arg2: memref<256x256xbf16, #tpu.memory_space<vmem>>, %arg3: memref<256x128xbf16, #tpu.memory_space<vmem>>, %arg4: memref<1x128xf32, #tpu.memory_space<vmem>>, %arg5: memref<256x128xf32, #tpu.memory_space<vmem>>, %arg6: memref<256x128xf32, #tpu.memory_space<vmem>>) attributes {dimension_semantics = [#tpu.dimension_semantics<parallel>, #tpu.dimension_semantics<arbitrary>], iteration_bounds = array<i64: 1, 1>, scalar_prefetch = 0 : i64, scratch_operands = 1 : i64, tpu.core_type = #tpu.core_type<tc>, window_params = [{transform_indices = @transform_0, window_bounds = array<i64: 256, 256>}, {transform_indices = @transform_1, window_bounds = array<i64: 256, 128>}, {pipeline_mode = #tpu.pipeline_mode<synchronous>, transform_indices = @transform_2, window_bounds = array<i64: 1, 128>}, {transform_indices = @transform_3, window_bounds = array<i64: 256, 128>}]} {
    %c0_i32 = arith.constant 0 : i32
    %0 = arith.cmpi eq, %arg1, %c0_i32 : i32
    %1 = arith.extui %0 : i1 to i32
    %c0_i32_0 = arith.constant 0 : i32
    %2 = arith.cmpi ne, %1, %c0_i32_0 : i32
    scf.if %2 {
      %cst_10 = arith.constant 0.000000e+00 : f32
      %12 = vector.broadcast %cst_10 : f32 to vector<256x128xf32>
      %c0_11 = arith.constant 0 : index
      %c0_12 = arith.constant 0 : index
      %13 = vector.load %arg6[%c0_11, %c0_12] : memref<256x128xf32, #tpu.memory_space<vmem>>, vector<256x128xf32>
      tpu.vector_store %arg6[%c0_11, %c0_12], %12 {strides = array<i32>} : memref<256x128xf32, #tpu.memory_space<vmem>>, vector<256x128xf32>,
    } else {
    }
    %c0 = arith.constant 0 : index
    %c0_1 = arith.constant 0 : index
    %3 = vector.load %arg6[%c0, %c0_1] : memref<256x128xf32, #tpu.memory_space<vmem>>, vector<256x128xf32>
    %c0_2 = arith.constant 0 : index
    %c0_3 = arith.constant 0 : index
    %4 = vector.load %arg2[%c0_2, %c0_3] : memref<256x256xbf16, #tpu.memory_space<vmem>>, vector<256x256xbf16>
    %c0_4 = arith.constant 0 : index
    %c0_5 = arith.constant 0 : index
    %5 = vector.load %arg3[%c0_4, %c0_5] : memref<256x128xbf16, #tpu.memory_space<vmem>>, vector<256x128xbf16>
    %cst = arith.constant dense<0.000000e+00> : vector<256x128xf32>
    %6 = tpu.matmul %4, %5, %cst {dimension_numbers = #tpu.dot_dimension_numbers<[1], [0], [0], [1], [0, 0, 1, 1], [], []>} : vector<256x256xbf16>, vector<256x128xbf16>, vector<256x128xf32> -> vector<256x128xf32>
    %7 = arith.addf %3, %6 : vector<256x128xf32>
    %c0_6 = arith.constant 0 : index
    %c0_7 = arith.constant 0 : index
    %8 = vector.load %arg6[%c0_6, %c0_7] : memref<256x128xf32, #tpu.memory_space<vmem>>, vector<256x128xf32>
    tpu.vector_store %arg6[%c0_6, %c0_7], %7 {strides = array<i32>} : memref<256x128xf32, #tpu.memory_space<vmem>>, vector<256x128xf32>,
    %c0_i32_8 = arith.constant 0 : i32
    %9 = arith.cmpi eq, %arg1, %c0_i32_8 : i32
    %10 = arith.extui %9 : i1 to i32
    %c0_i32_9 = arith.constant 0 : i32
    %11 = arith.cmpi ne, %10, %c0_i32_9 : i32
    scf.if %11 {
      %c0_10 = arith.constant 0 : index
      %c0_11 = arith.constant 0 : index
      %12 = vector.load %arg6[%c0_10, %c0_11] : memref<256x128xf32, #tpu.memory_space<vmem>>, vector<256x128xf32>
      %c0_12 = arith.constant 0 : index
      %c0_13 = arith.constant 0 : index
      %13 = vector.load %arg4[%c0_12, %c0_13] : memref<1x128xf32, #tpu.memory_space<vmem>>, vector<1x128xf32>
      %14 = vector.broadcast %13 : vector<1x128xf32> to vector<256x128xf32>
      %15 = arith.addf %12, %14 : vector<256x128xf32>
      %c0_14 = arith.constant 0 : index
      %c0_15 = arith.constant 0 : index
      %16 = vector.load %arg5[%c0_14, %c0_15] : memref<256x128xf32, #tpu.memory_space<vmem>>, vector<256x128xf32>
      tpu.vector_store %arg5[%c0_14, %c0_15], %15 {strides = array<i32>} : memref<256x128xf32, #tpu.memory_space<vmem>>, vector<256x128xf32>,
    } else {
    }
    return
  }
  func.func @transform_0(%arg0: i32, %arg1: i32) -> (i32, i32) {
    %c0_i32 = arith.constant 0 : i32
    return %arg0, %arg1 : i32, i32
  }
  func.func @transform_1(%arg0: i32, %arg1: i32) -> (i32, i32) {
    %c0_i32 = arith.constant 0 : i32
    %c0_i32_0 = arith.constant 0 : i32
    return %arg1, %c0_i32 : i32, i32
  }
  func.func @transform_2(%arg0: i32, %arg1: i32) -> (i32, i32) {
    %c0_i32 = arith.constant 0 : i32
    %c0_i32_0 = arith.constant 0 : i32
    %c0_i32_1 = arith.constant 0 : i32
    return %c0_i32, %c0_i32_0 : i32, i32
  }
  func.func @transform_3(%arg0: i32, %arg1: i32) -> (i32, i32) {
    %c0_i32 = arith.constant 0 : i32
    %c0_i32_0 = arith.constant 0 : i32
    return %arg0, %c0_i32 : i32, i32
  }
}

</mosaic_0001>

<bundles_post_ra>
// kernel: gnn_autoencoder_pallas.7
= control target key start
LH: loop header
LB: loop body
LE: loop exit
PB: predicated region body
PF: predicated region fallthrough
CT: control target
= control target key end

     0   :  { %s1276_s1 = inlined_call_operand.vmem [shape: bf16[256,128], index: 1, kind: input, shape index: {}]   ;;  %s1277_s0 = inlined_call_operand.vmem [shape: bf16[256,256], index: 0, kind: input, shape index: {}]   ;;  %s1278_s2 = inlined_call_operand.vmem [shape: f32[1,128], index: 2, kind: input, shape index: {}]   ;;  %s1279_s3 = inlined_call_operand.vmem [shape: f32[256,128], index: 3, kind: output, shape index: {}]  }
   0x1   :  { %v915_v0 = vld [vmem:[%s1276_s1 + $0x78] sm:$0xff]   ;;  %v917_v2 = vld [vmem:[%s1276_s1 + $0x70] sm:$0xff]   ;;  %v919_v4 = vld [vmem:[%s1276_s1 + $0x68] sm:$0xff]  }
   0x2   :  { %v916_v1 = vld [vmem:[%s1276_s1 + $0x38] sm:$0xff]   ;;  %787 = vmatprep.subr.bf16.mxu0 %v915_v0  ;;  %899 = vmatprep.subr.bf16.mxu1 %v915_v0  ;;  %v918_v3 = vld [vmem:[%s1276_s1 + $0x30] sm:$0xff]   ;;  %v920_v5 = vld [vmem:[%s1276_s1 + $0x28] sm:$0xff]  }
   0x3   :  { %788 = vmatpush3.bf16.msra.mxu0 %v916_v1  ;;  %907 = vmatpush3.bf16.msra.mxu1 %v916_v1  ;;  %v921_v6 = vld [vmem:[%s1276_s1 + $0x60] sm:$0xff]   ;;  %v923_v8 = vld [vmem:[%s1276_s1 + $0x58] sm:$0xff]   ;;  %v925_v10 = vld [vmem:[%s1276_s1 + $0x50] sm:$0xff]  }
   0x4   :  { %789 = vmatprep.subr.bf16.mxu0 %v917_v2  ;;  %900 = vmatprep.subr.bf16.mxu1 %v917_v2  ;;  %v922_v7 = vld [vmem:[%s1276_s1 + $0x20] sm:$0xff]   ;;  %v924_v9 = vld [vmem:[%s1276_s1 + $0x18] sm:$0xff]   ;;  %v926_v13 = vld [vmem:[%s1276_s1 + $0x10] sm:$0xff]  }
   0x5   :  { %v933_v11 = vld [vmem:[%s1277_s0 + $0x4] ss:$8 sps:$4 sm:$0xff]   ;;  %v931_v18 = vld [vmem:[%s1277_s0] ss:$8 sps:$4 sm:$0xff]   ;;  %v937_v20 = vld [vmem:[%s1277_s0 + $0x14] ss:$8 sps:$4 sm:$0xff]  }
   0x6   :  { %v936_v12 = vld [vmem:[%s1277_s0 + $0x84] ss:$8 sps:$4 sm:$0xff]   ;;  %435 = vmatprep.mubr.bf16.mxu0 %v933_v11  ;;  %v934_v19 = vld [vmem:[%s1277_s0 + $0x80] ss:$8 sps:$4 sm:$0xff]   ;;  %v939_v21 = vld [vmem:[%s1277_s0 + $0x94] ss:$8 sps:$4 sm:$0xff]  }
   0x7   :  { %790 = vmatpush3.bf16.msra.mxu0 %v918_v3  ;;  %908 = vmatpush3.bf16.msra.mxu1 %v918_v3  ;;  %v927_v14 = vld [vmem:[%s1276_s1 + $0x48] sm:$0xff]   ;;  %v929_v16 = vld [vmem:[%s1276_s1 + $0x40] sm:$0xff]   ;;  %v941_v22 = vld [vmem:[%s1277_s0 + $0x10] ss:$8 sps:$4 sm:$0xff]  }
   0x8   :  { %791 = vmatprep.subr.bf16.mxu0 %v919_v4  ;;  %901 = vmatprep.subr.bf16.mxu1 %v919_v4  ;;  %v928_v15 = vld [vmem:[%s1276_s1 + $0x8] sm:$0xff]   ;;  %v930_v17 = vld [vmem:[%s1276_s1] sm:$0xff]   ;;  %v942_v23 = vld [vmem:[%s1277_s0 + $0x90] ss:$8 sps:$4 sm:$0xff]  }
   0x9   :  { %499 = vmatprep.mubr.bf16.mxu1 %v936_v12  ;;  %v943_v24 = vld [vmem:[%s1277_s0 + $0x24] ss:$8 sps:$4 sm:$0xff]   ;;  %v947_v26 = vld [vmem:[%s1277_s0 + $0x20] ss:$8 sps:$4 sm:$0xff]   ;;  %v949_v28 = vld [vmem:[%s1277_s0 + $0x34] ss:$8 sps:$4 sm:$0xff]  }
   0xa   :  { %v945_v25 = vld [vmem:[%s1277_s0 + $0xa4] ss:$8 sps:$4 sm:$0xff]   ;;  %v948_v27 = vld [vmem:[%s1277_s0 + $0xa0] ss:$8 sps:$4 sm:$0xff]   ;;  %v951_v29 = vld [vmem:[%s1277_s0 + $0xb4] ss:$8 sps:$4 sm:$0xff]  }
   0xb   :  { %792 = vmatpush3.bf16.msra.mxu0 %v920_v5  ;;  %909 = vmatpush3.bf16.msra.mxu1 %v920_v5  ;;  %v953_v30 = vld [vmem:[%s1277_s0 + $0x30] ss:$8 sps:$4 sm:$0xff]   ;;  %v955_v32 = vld [vmem:[%s1277_s0 + $0x44] ss:$8 sps:$4 sm:$0xff]   ;;  %v959_v34 = vld [vmem:[%s1277_s0 + $0x40] ss:$8 sps:$4 sm:$0xff]  }
   0xc   :  { %793 = vmatprep.subr.bf16.mxu0 %v921_v6  ;;  %902 = vmatprep.subr.bf16.mxu1 %v921_v6  ;;  %v954_v31 = vld [vmem:[%s1277_s0 + $0xb0] ss:$8 sps:$4 sm:$0xff]   ;;  %v957_v33 = vld [vmem:[%s1277_s0 + $0xc4] ss:$8 sps:$4 sm:$0xff]   ;;  %v960_v35 = vld [vmem:[%s1277_s0 + $0xc0] ss:$8 sps:$4 sm:$0xff]  }
   0xd   :  { %v961_v36 = vld [vmem:[%s1277_s0 + $0x54] ss:$8 sps:$4 sm:$0xff]   ;;  %v965_v38 = vld [vmem:[%s1277_s0 + $0x50] ss:$8 sps:$4 sm:$0xff]   ;;  %v967_v40 = vld [vmem:[%s1277_s0 + $0x64] ss:$8 sps:$4 sm:$0xff]  }
   0xe   :  { %v963_v37 = vld [vmem:[%s1277_s0 + $0xd4] ss:$8 sps:$4 sm:$0xff]   ;;  %v966_v39 = vld [vmem:[%s1277_s0 + $0xd0] ss:$8 sps:$4 sm:$0xff]   ;;  %v969_v41 = vld [vmem:[%s1277_s0 + $0xe4] ss:$8 sps:$4 sm:$0xff]  }
   0xf   :  { %794 = vmatpush3.bf16.msra.mxu0 %v922_v7  ;;  %910 = vmatpush3.bf16.msra.mxu1 %v922_v7  ;;  %v971_v42 = vld [vmem:[%s1277_s0 + $0x60] ss:$8 sps:$4 sm:$0xff]   ;;  %v973_v44 = vld [vmem:[%s1277_s0 + $0x74] ss:$8 sps:$4 sm:$0xff]   ;;  %v977_v46 = vld [vmem:[%s1277_s0 + $0x70] ss:$8 sps:$4 sm:$0xff]  }
  0x10   :  { %795 = vmatprep.subr.bf16.mxu0 %v923_v8  ;;  %903 = vmatprep.subr.bf16.mxu1 %v923_v8  ;;  %v972_v43 = vld [vmem:[%s1277_s0 + $0xe0] ss:$8 sps:$4 sm:$0xff]   ;;  %v975_v45 = vld [vmem:[%s1277_s0 + $0xf4] ss:$8 sps:$4 sm:$0xff]   ;;  %v978_v47 = vld [vmem:[%s1277_s0 + $0xf0] ss:$8 sps:$4 sm:$0xff]  }
  0x11   :  { %v1146_v51 = vld [vmem:[%s1278_s2] ss:$0 sm:$0xff] }
  0x13   :  { %796 = vmatpush3.bf16.msra.mxu0 %v924_v9  ;;  %911 = vmatpush3.bf16.msra.mxu1 %v924_v9 }
  0x14   :  { %797 = vmatprep.subr.bf16.mxu0 %v925_v10  ;;  %904 = vmatprep.subr.bf16.mxu1 %v925_v10 }
  0x17   :  { %798 = vmatpush3.bf16.msra.mxu0 %v926_v13  ;;  %912 = vmatpush3.bf16.msra.mxu1 %v926_v13 }
  0x18   :  { %799 = vmatprep.subr.bf16.mxu0 %v927_v14  ;;  %905 = vmatprep.subr.bf16.mxu1 %v927_v14 }
  0x1b   :  { %800 = vmatpush3.bf16.msra.mxu0 %v928_v15  ;;  %913 = vmatpush3.bf16.msra.mxu1 %v928_v15 }
  0x1c   :  { %801 = vmatprep.subr.bf16.mxu0 %v929_v16  ;;  %906 = vmatprep.subr.bf16.mxu1 %v929_v16 }
  0x1f   :  { %802 = vmatpush3.bf16.msra.mxu0 %v930_v17  ;;  %914 = vmatpush3.bf16.msra.mxu1 %v930_v17 }
  0x22   :  { %436 = vmatmul.mubr.bf16.vlgmr.msra.gmra.mxu0 %v931_v18  ;;  %500 = vmatmul.mubr.bf16.vlgmr.msra.gmra.mxu1 %v934_v19 }
  0x23   :  { %443 = vmatprep.mubr.bf16.mxu0 %v937_v20  ;;  %507 = vmatprep.mubr.bf16.mxu1 %v939_v21 }
  0x2a   :  { %444 = vmatmul.mubr.bf16.gmra.mxu0 %v941_v22  ;;  %508 = vmatmul.mubr.bf16.gmra.mxu1 %v942_v23 }
  0x2b   :  { %451 = vmatprep.mubr.bf16.mxu0 %v943_v24  ;;  %515 = vmatprep.mubr.bf16.mxu1 %v945_v25 }
  0x32   :  { %452 = vmatmul.mubr.bf16.gmra.mxu0 %v947_v26  ;;  %516 = vmatmul.mubr.bf16.gmra.mxu1 %v948_v27 }
  0x33   :  { %459 = vmatprep.mubr.bf16.mxu0 %v949_v28  ;;  %523 = vmatprep.mubr.bf16.mxu1 %v951_v29 }
  0x3a   :  { %460 = vmatmul.mubr.bf16.gmra.mxu0 %v953_v30  ;;  %524 = vmatmul.mubr.bf16.gmra.mxu1 %v954_v31 }
  0x3b   :  { %467 = vmatprep.mubr.bf16.mxu0 %v955_v32  ;;  %531 = vmatprep.mubr.bf16.mxu1 %v957_v33 }
  0x42   :  { %468 = vmatmul.mubr.bf16.gmra.mxu0 %v959_v34  ;;  %532 = vmatmul.mubr.bf16.gmra.mxu1 %v960_v35 }
  0x43   :  { %475 = vmatprep.mubr.bf16.mxu0 %v961_v36  ;;  %539 = vmatprep.mubr.bf16.mxu1 %v963_v37 }
  0x4a   :  { %476 = vmatmul.mubr.bf16.gmra.mxu0 %v965_v38  ;;  %540 = vmatmul.mubr.bf16.gmra.mxu1 %v966_v39 }
  0x4b   :  { %483 = vmatprep.mubr.bf16.mxu0 %v967_v40  ;;  %547 = vmatprep.mubr.bf16.mxu1 %v969_v41 }
  0x52   :  { %484 = vmatmul.mubr.bf16.gmra.mxu0 %v971_v42  ;;  %548 = vmatmul.mubr.bf16.gmra.mxu1 %v972_v43 }
  0x53   :  { %491 = vmatprep.mubr.bf16.mxu0 %v973_v44  ;;  %555 = vmatprep.mubr.bf16.mxu1 %v975_v45 }
  0x5a   :  { %492 = vmatmul.mubr.bf16.gmra.mxu0 %v977_v46  ;;  %556 = vmatmul.mubr.bf16.gmra.mxu1 %v978_v47 }
  0xe2   :  { %v803_v48 = vpop.f32.mrf.mxu0  ;;  %v851_v49 = vpop.f32.mrf.mxu1 }
  0xe4   :  { %v804_v50 = vpop.f32.mrf.mxu0  ;;  %v852_v52 = vpop.f32.mrf.mxu1 }
  0xe5   :  { %v805_v53 = vadd.f32 %v804_v50, %v803_v48  ;;  %v853_v54 = vadd.f32 %v852_v52, %v851_v49 }
  0xe6   :  { %v806_v55 = vpop.f32.mrf.mxu0  ;;  %v854_v56 = vpop.f32.mrf.mxu1 }
  0xe7   :  { %v670_v57 = vadd.f32 %v805_v53, %v1146_v51  ;;  %v686_v58 = vadd.f32 %v853_v54, %v1146_v51 }
  0xe8   :  { %v807_v59 = vpop.f32.mrf.mxu0  ;;  %v855_v60 = vpop.f32.mrf.mxu1 }
  0xe9   :  { %702 = vst [vmem:[%s1279_s3] sm:$0xff] %v670_v57  ;;  %718 = vst [vmem:[%s1279_s3 + $0x80] sm:$0xff] %v686_v58  ;;  %v808_v61 = vadd.f32 %v807_v59, %v806_v55  ;;  %v856_v62 = vadd.f32 %v855_v60, %v854_v56 }
  0xea   :  { %v809_v63 = vpop.f32.mrf.mxu0  ;;  %v857_v0 = vpop.f32.mrf.mxu1 }
  0xeb   :  { %v671_v1 = vadd.f32 %v808_v61, %v1146_v51  ;;  %v687_v2 = vadd.f32 %v856_v62, %v1146_v51 }
  0xec   :  { %v810_v3 = vpop.f32.mrf.mxu0  ;;  %v858_v4 = vpop.f32.mrf.mxu1 }
  0xed   :  { %703 = vst [vmem:[%s1279_s3 + $0x8] sm:$0xff] %v671_v1  ;;  %719 = vst [vmem:[%s1279_s3 + $0x88] sm:$0xff] %v687_v2  ;;  %v811_v5 = vadd.f32 %v810_v3, %v809_v63  ;;  %v859_v6 = vadd.f32 %v858_v4, %v857_v0 }
  0xee   :  { %v812_v7 = vpop.f32.mrf.mxu0  ;;  %v860_v8 = vpop.f32.mrf.mxu1 }
  0xef   :  { %v672_v9 = vadd.f32 %v811_v5, %v1146_v51  ;;  %v688_v10 = vadd.f32 %v859_v6, %v1146_v51 }
  0xf0   :  { %v813_v11 = vpop.f32.mrf.mxu0  ;;  %v861_v12 = vpop.f32.mrf.mxu1 }
  0xf1   :  { %704 = vst [vmem:[%s1279_s3 + $0x10] sm:$0xff] %v672_v9  ;;  %720 = vst [vmem:[%s1279_s3 + $0x90] sm:$0xff] %v688_v10  ;;  %v814_v13 = vadd.f32 %v813_v11, %v812_v7  ;;  %v862_v14 = vadd.f32 %v861_v12, %v860_v8 }
  0xf2   :  { %v815_v15 = vpop.f32.mrf.mxu0  ;;  %v863_v16 = vpop.f32.mrf.mxu1 }
  0xf3   :  { %v673_v17 = vadd.f32 %v814_v13, %v1146_v51  ;;  %v689_v18 = vadd.f32 %v862_v14, %v1146_v51 }
  0xf4   :  { %v816_v19 = vpop.f32.mrf.mxu0  ;;  %v864_v20 = vpop.f32.mrf.mxu1 }
  0xf5   :  { %705 = vst [vmem:[%s1279_s3 + $0x18] sm:$0xff] %v673_v17  ;;  %721 = vst [vmem:[%s1279_s3 + $0x98] sm:$0xff] %v689_v18  ;;  %v817_v21 = vadd.f32 %v816_v19, %v815_v15  ;;  %v865_v22 = vadd.f32 %v864_v20, %v863_v16 }
  0xf6   :  { %v818_v23 = vpop.f32.mrf.mxu0  ;;  %v866_v24 = vpop.f32.mrf.mxu1 }
  0xf7   :  { %v674_v25 = vadd.f32 %v817_v21, %v1146_v51  ;;  %v690_v26 = vadd.f32 %v865_v22, %v1146_v51 }
  0xf8   :  { %v819_v27 = vpop.f32.mrf.mxu0  ;;  %v867_v28 = vpop.f32.mrf.mxu1 }
  0xf9   :  { %706 = vst [vmem:[%s1279_s3 + $0x20] sm:$0xff] %v674_v25  ;;  %722 = vst [vmem:[%s1279_s3 + $0xa0] sm:$0xff] %v690_v26  ;;  %v820_v29 = vadd.f32 %v819_v27, %v818_v23  ;;  %v868_v30 = vadd.f32 %v867_v28, %v866_v24 }
  0xfa   :  { %v821_v31 = vpop.f32.mrf.mxu0  ;;  %v869_v32 = vpop.f32.mrf.mxu1 }
  0xfb   :  { %v675_v33 = vadd.f32 %v820_v29, %v1146_v51  ;;  %v691_v34 = vadd.f32 %v868_v30, %v1146_v51 }
  0xfc   :  { %v822_v35 = vpop.f32.mrf.mxu0  ;;  %v870_v36 = vpop.f32.mrf.mxu1 }
  0xfd   :  { %707 = vst [vmem:[%s1279_s3 + $0x28] sm:$0xff] %v675_v33  ;;  %723 = vst [vmem:[%s1279_s3 + $0xa8] sm:$0xff] %v691_v34  ;;  %v823_v37 = vadd.f32 %v822_v35, %v821_v31  ;;  %v871_v38 = vadd.f32 %v870_v36, %v869_v32 }
  0xfe   :  { %v824_v39 = vpop.f32.mrf.mxu0  ;;  %v872_v40 = vpop.f32.mrf.mxu1 }
  0xff   :  { %v676_v41 = vadd.f32 %v823_v37, %v1146_v51  ;;  %v692_v42 = vadd.f32 %v871_v38, %v1146_v51 }
 0x100   :  { %v825_v43 = vpop.f32.mrf.mxu0  ;;  %v873_v44 = vpop.f32.mrf.mxu1 }
 0x101   :  { %708 = vst [vmem:[%s1279_s3 + $0x30] sm:$0xff] %v676_v41  ;;  %724 = vst [vmem:[%s1279_s3 + $0xb0] sm:$0xff] %v692_v42  ;;  %v826_v45 = vadd.f32 %v825_v43, %v824_v39  ;;  %v874_v46 = vadd.f32 %v873_v44, %v872_v40 }
 0x102   :  { %v827_v47 = vpop.f32.mrf.mxu0  ;;  %v875_v48 = vpop.f32.mrf.mxu1 }
 0x103   :  { %v677_v49 = vadd.f32 %v826_v45, %v1146_v51  ;;  %v693_v50 = vadd.f32 %v874_v46, %v1146_v51 }
 0x104   :  { %v828_v52 = vpop.f32.mrf.mxu0  ;;  %v876_v53 = vpop.f32.mrf.mxu1 }
 0x105   :  { %709 = vst [vmem:[%s1279_s3 + $0x38] sm:$0xff] %v677_v49  ;;  %725 = vst [vmem:[%s1279_s3 + $0xb8] sm:$0xff] %v693_v50  ;;  %v829_v54 = vadd.f32 %v828_v52, %v827_v47  ;;  %v877_v55 = vadd.f32 %v876_v53, %v875_v48 }
 0x106   :  { %v830_v56 = vpop.f32.mrf.mxu0  ;;  %v878_v57 = vpop.f32.mrf.mxu1 }
 0x107   :  { %v678_v58 = vadd.f32 %v829_v54, %v1146_v51  ;;  %v694_v59 = vadd.f32 %v877_v55, %v1146_v51 }
 0x108   :  { %v831_v60 = vpop.f32.mrf.mxu0  ;;  %v879_v61 = vpop.f32.mrf.mxu1 }
 0x109   :  { %710 = vst [vmem:[%s1279_s3 + $0x40] sm:$0xff] %v678_v58  ;;  %726 = vst [vmem:[%s1279_s3 + $0xc0] sm:$0xff] %v694_v59  ;;  %v832_v62 = vadd.f32 %v831_v60, %v830_v56  ;;  %v880_v63 = vadd.f32 %v879_v61, %v878_v57 }
 0x10a   :  { %v833_v0 = vpop.f32.mrf.mxu0  ;;  %v881_v1 = vpop.f32.mrf.mxu1 }
 0x10b   :  { %v679_v2 = vadd.f32 %v832_v62, %v1146_v51  ;;  %v695_v3 = vadd.f32 %v880_v63, %v1146_v51 }
 0x10c   :  { %v834_v4 = vpop.f32.mrf.mxu0  ;;  %v882_v5 = vpop.f32.mrf.mxu1 }
 0x10d   :  { %711 = vst [vmem:[%s1279_s3 + $0x48] sm:$0xff] %v679_v2  ;;  %727 = vst [vmem:[%s1279_s3 + $0xc8] sm:$0xff] %v695_v3  ;;  %v835_v6 = vadd.f32 %v834_v4, %v833_v0  ;;  %v883_v7 = vadd.f32 %v882_v5, %v881_v1 }
 0x10e   :  { %v836_v8 = vpop.f32.mrf.mxu0  ;;  %v884_v9 = vpop.f32.mrf.mxu1 }
 0x10f   :  { %v680_v10 = vadd.f32 %v835_v6, %v1146_v51  ;;  %v696_v11 = vadd.f32 %v883_v7, %v1146_v51 }
 0x110   :  { %v837_v12 = vpop.f32.mrf.mxu0  ;;  %v885_v13 = vpop.f32.mrf.mxu1 }
 0x111   :  { %712 = vst [vmem:[%s1279_s3 + $0x50] sm:$0xff] %v680_v10  ;;  %728 = vst [vmem:[%s1279_s3 + $0xd0] sm:$0xff] %v696_v11  ;;  %v838_v14 = vadd.f32 %v837_v12, %v836_v8  ;;  %v886_v15 = vadd.f32 %v885_v13, %v884_v9 }
 0x112   :  { %v839_v16 = vpop.f32.mrf.mxu0  ;;  %v887_v17 = vpop.f32.mrf.mxu1 }
 0x113   :  { %v681_v18 = vadd.f32 %v838_v14, %v1146_v51  ;;  %v697_v19 = vadd.f32 %v886_v15, %v1146_v51 }
 0x114   :  { %v840_v20 = vpop.f32.mrf.mxu0  ;;  %v888_v21 = vpop.f32.mrf.mxu1 }
 0x115   :  { %713 = vst [vmem:[%s1279_s3 + $0x58] sm:$0xff] %v681_v18  ;;  %729 = vst [vmem:[%s1279_s3 + $0xd8] sm:$0xff] %v697_v19  ;;  %v841_v22 = vadd.f32 %v840_v20, %v839_v16  ;;  %v889_v23 = vadd.f32 %v888_v21, %v887_v17 }
 0x116   :  { %v842_v24 = vpop.f32.mrf.mxu0  ;;  %v890_v25 = vpop.f32.mrf.mxu1 }
 0x117   :  { %v682_v26 = vadd.f32 %v841_v22, %v1146_v51  ;;  %v698_v27 = vadd.f32 %v889_v23, %v1146_v51 }
 0x118   :  { %v843_v28 = vpop.f32.mrf.mxu0  ;;  %v891_v29 = vpop.f32.mrf.mxu1 }
 0x119   :  { %714 = vst [vmem:[%s1279_s3 + $0x60] sm:$0xff] %v682_v26  ;;  %730 = vst [vmem:[%s1279_s3 + $0xe0] sm:$0xff] %v698_v27  ;;  %v844_v30 = vadd.f32 %v843_v28, %v842_v24  ;;  %v892_v31 = vadd.f32 %v891_v29, %v890_v25 }
 0x11a   :  { %v845_v32 = vpop.f32.mrf.mxu0  ;;  %v893_v33 = vpop.f32.mrf.mxu1 }
 0x11b   :  { %v683_v34 = vadd.f32 %v844_v30, %v1146_v51  ;;  %v699_v35 = vadd.f32 %v892_v31, %v1146_v51 }
 0x11c   :  { %v846_v36 = vpop.f32.mrf.mxu0  ;;  %v894_v37 = vpop.f32.mrf.mxu1 }
 0x11d   :  { %715 = vst [vmem:[%s1279_s3 + $0x68] sm:$0xff] %v683_v34  ;;  %731 = vst [vmem:[%s1279_s3 + $0xe8] sm:$0xff] %v699_v35  ;;  %v847_v38 = vadd.f32 %v846_v36, %v845_v32  ;;  %v895_v39 = vadd.f32 %v894_v37, %v893_v33 }
 0x11e   :  { %v848_v40 = vpop.f32.mrf.mxu0  ;;  %v896_v41 = vpop.f32.mrf.mxu1 }
 0x11f   :  { %v684_v42 = vadd.f32 %v847_v38, %v1146_v51  ;;  %v700_v43 = vadd.f32 %v895_v39, %v1146_v51 }
 0x120   :  { %v849_v44 = vpop.f32.mrf.mxu0  ;;  %v897_v45 = vpop.f32.mrf.mxu1 }
 0x121   :  { %716 = vst [vmem:[%s1279_s3 + $0x70] sm:$0xff] %v684_v42  ;;  %732 = vst [vmem:[%s1279_s3 + $0xf0] sm:$0xff] %v700_v43  ;;  %v850_v46 = vadd.f32 %v849_v44, %v848_v40  ;;  %v898_v47 = vadd.f32 %v897_v45, %v896_v41 }
 0x123   :  { %v685_v48 = vadd.f32 %v850_v46, %v1146_v51  ;;  %v701_v49 = vadd.f32 %v898_v47, %v1146_v51 }
 0x125   :  { %717 = vst [vmem:[%s1279_s3 + $0x78] sm:$0xff] %v685_v48  ;;  %733 = vst [vmem:[%s1279_s3 + $0xf8] sm:$0xff] %v701_v49 }

// kernel: gnn_autoencoder_pallas.5
= control target key start
LH: loop header
LB: loop body
LE: loop exit
PB: predicated region body
PF: predicated region fallthrough
CT: control target
= control target key end

     0   :  { %s1515_s1 = inlined_call_operand.vmem [shape: bf16[256,128], index: 1, kind: input, shape index: {}]   ;;  %s1516_s0 = inlined_call_operand.vmem [shape: bf16[256,256], index: 0, kind: input, shape index: {}]   ;;  %s1517_s2 = inlined_call_operand.vmem [shape: f32[1,128], index: 2, kind: input, shape index: {}]   ;;  %s1518_s3 = inlined_call_operand.vmem [shape: bf16[256,128], index: 3, kind: output, shape index: {}]  }
   0x1   :  { %v1202_v0 = vld [vmem:[%s1515_s1 + $0x78] sm:$0xff]   ;;  %v1204_v2 = vld [vmem:[%s1515_s1 + $0x70] sm:$0xff]   ;;  %v1206_v4 = vld [vmem:[%s1515_s1 + $0x68] sm:$0xff]  }
   0x2   :  { %v1203_v1 = vld [vmem:[%s1515_s1 + $0x38] sm:$0xff]   ;;  %1074 = vmatprep.subr.bf16.mxu0 %v1202_v0  ;;  %1186 = vmatprep.subr.bf16.mxu1 %v1202_v0  ;;  %v1205_v3 = vld [vmem:[%s1515_s1 + $0x30] sm:$0xff]   ;;  %v1207_v5 = vld [vmem:[%s1515_s1 + $0x28] sm:$0xff]  }
   0x3   :  { %1075 = vmatpush3.bf16.msra.mxu0 %v1203_v1  ;;  %1194 = vmatpush3.bf16.msra.mxu1 %v1203_v1  ;;  %v1208_v6 = vld [vmem:[%s1515_s1 + $0x60] sm:$0xff]   ;;  %v1210_v8 = vld [vmem:[%s1515_s1 + $0x58] sm:$0xff]   ;;  %v1212_v10 = vld [vmem:[%s1515_s1 + $0x50] sm:$0xff]  }
   0x4   :  { %1076 = vmatprep.subr.bf16.mxu0 %v1204_v2  ;;  %1187 = vmatprep.subr.bf16.mxu1 %v1204_v2  ;;  %v1209_v7 = vld [vmem:[%s1515_s1 + $0x20] sm:$0xff]   ;;  %v1211_v9 = vld [vmem:[%s1515_s1 + $0x18] sm:$0xff]   ;;  %v1213_v13 = vld [vmem:[%s1515_s1 + $0x10] sm:$0xff]  }
   0x5   :  { %v1220_v11 = vld [vmem:[%s1516_s0 + $0x4] ss:$8 sps:$4 sm:$0xff]   ;;  %v1218_v18 = vld [vmem:[%s1516_s0] ss:$8 sps:$4 sm:$0xff]   ;;  %v1224_v20 = vld [vmem:[%s1516_s0 + $0x14] ss:$8 sps:$4 sm:$0xff]  }
   0x6   :  { %v1223_v12 = vld [vmem:[%s1516_s0 + $0x84] ss:$8 sps:$4 sm:$0xff]   ;;  %435 = vmatprep.mubr.bf16.mxu0 %v1220_v11  ;;  %v1221_v19 = vld [vmem:[%s1516_s0 + $0x80] ss:$8 sps:$4 sm:$0xff]   ;;  %v1226_v21 = vld [vmem:[%s1516_s0 + $0x94] ss:$8 sps:$4 sm:$0xff]  }
   0x7   :  { %1077 = vmatpush3.bf16.msra.mxu0 %v1205_v3  ;;  %1195 = vmatpush3.bf16.msra.mxu1 %v1205_v3  ;;  %v1214_v14 = vld [vmem:[%s1515_s1 + $0x48] sm:$0xff]   ;;  %v1216_v16 = vld [vmem:[%s1515_s1 + $0x40] sm:$0xff]   ;;  %v1228_v22 = vld [vmem:[%s1516_s0 + $0x10] ss:$8 sps:$4 sm:$0xff]  }
   0x8   :  { %1078 = vmatprep.subr.bf16.mxu0 %v1206_v4  ;;  %1188 = vmatprep.subr.bf16.mxu1 %v1206_v4  ;;  %v1215_v15 = vld [vmem:[%s1515_s1 + $0x8] sm:$0xff]   ;;  %v1217_v17 = vld [vmem:[%s1515_s1] sm:$0xff]   ;;  %v1229_v23 = vld [vmem:[%s1516_s0 + $0x90] ss:$8 sps:$4 sm:$0xff]  }
   0x9   :  { %499 = vmatprep.mubr.bf16.mxu1 %v1223_v12  ;;  %v1230_v24 = vld [vmem:[%s1516_s0 + $0x24] ss:$8 sps:$4 sm:$0xff]   ;;  %v1234_v26 = vld [vmem:[%s1516_s0 + $0x20] ss:$8 sps:$4 sm:$0xff]   ;;  %v1236_v28 = vld [vmem:[%s1516_s0 + $0x34] ss:$8 sps:$4 sm:$0xff]  }
   0xa   :  { %v1232_v25 = vld [vmem:[%s1516_s0 + $0xa4] ss:$8 sps:$4 sm:$0xff]   ;;  %v1235_v27 = vld [vmem:[%s1516_s0 + $0xa0] ss:$8 sps:$4 sm:$0xff]   ;;  %v1238_v29 = vld [vmem:[%s1516_s0 + $0xb4] ss:$8 sps:$4 sm:$0xff]  }
   0xb   :  { %1079 = vmatpush3.bf16.msra.mxu0 %v1207_v5  ;;  %1196 = vmatpush3.bf16.msra.mxu1 %v1207_v5  ;;  %v1240_v30 = vld [vmem:[%s1516_s0 + $0x30] ss:$8 sps:$4 sm:$0xff]   ;;  %v1242_v32 = vld [vmem:[%s1516_s0 + $0x44] ss:$8 sps:$4 sm:$0xff]   ;;  %v1246_v34 = vld [vmem:[%s1516_s0 + $0x40] ss:$8 sps:$4 sm:$0xff]  }
   0xc   :  { %1080 = vmatprep.subr.bf16.mxu0 %v1208_v6  ;;  %1189 = vmatprep.subr.bf16.mxu1 %v1208_v6  ;;  %v1241_v31 = vld [vmem:[%s1516_s0 + $0xb0] ss:$8 sps:$4 sm:$0xff]   ;;  %v1244_v33 = vld [vmem:[%s1516_s0 + $0xc4] ss:$8 sps:$4 sm:$0xff]   ;;  %v1247_v35 = vld [vmem:[%s1516_s0 + $0xc0] ss:$8 sps:$4 sm:$0xff]  }
   0xd   :  { %v1248_v36 = vld [vmem:[%s1516_s0 + $0x54] ss:$8 sps:$4 sm:$0xff]   ;;  %v1252_v38 = vld [vmem:[%s1516_s0 + $0x50] ss:$8 sps:$4 sm:$0xff]   ;;  %v1254_v40 = vld [vmem:[%s1516_s0 + $0x64] ss:$8 sps:$4 sm:$0xff]  }
   0xe   :  { %v1250_v37 = vld [vmem:[%s1516_s0 + $0xd4] ss:$8 sps:$4 sm:$0xff]   ;;  %v1253_v39 = vld [vmem:[%s1516_s0 + $0xd0] ss:$8 sps:$4 sm:$0xff]   ;;  %v1256_v41 = vld [vmem:[%s1516_s0 + $0xe4] ss:$8 sps:$4 sm:$0xff]  }
   0xf   :  { %1081 = vmatpush3.bf16.msra.mxu0 %v1209_v7  ;;  %1197 = vmatpush3.bf16.msra.mxu1 %v1209_v7  ;;  %v1258_v42 = vld [vmem:[%s1516_s0 + $0x60] ss:$8 sps:$4 sm:$0xff]   ;;  %v1260_v44 = vld [vmem:[%s1516_s0 + $0x74] ss:$8 sps:$4 sm:$0xff]   ;;  %v1264_v46 = vld [vmem:[%s1516_s0 + $0x70] ss:$8 sps:$4 sm:$0xff]  }
  0x10   :  { %1082 = vmatprep.subr.bf16.mxu0 %v1210_v8  ;;  %1190 = vmatprep.subr.bf16.mxu1 %v1210_v8  ;;  %v1259_v43 = vld [vmem:[%s1516_s0 + $0xe0] ss:$8 sps:$4 sm:$0xff]   ;;  %v1262_v45 = vld [vmem:[%s1516_s0 + $0xf4] ss:$8 sps:$4 sm:$0xff]   ;;  %v1265_v47 = vld [vmem:[%s1516_s0 + $0xf0] ss:$8 sps:$4 sm:$0xff]  }
  0x11   :  { %v1433_v56 = vld [vmem:[%s1517_s2] ss:$0 sm:$0xff] }
  0x13   :  { %1083 = vmatpush3.bf16.msra.mxu0 %v1211_v9  ;;  %1198 = vmatpush3.bf16.msra.mxu1 %v1211_v9 }
  0x14   :  { %1084 = vmatprep.subr.bf16.mxu0 %v1212_v10  ;;  %1191 = vmatprep.subr.bf16.mxu1 %v1212_v10 }
  0x17   :  { %1085 = vmatpush3.bf16.msra.mxu0 %v1213_v13  ;;  %1199 = vmatpush3.bf16.msra.mxu1 %v1213_v13 }
  0x18   :  { %1086 = vmatprep.subr.bf16.mxu0 %v1214_v14  ;;  %1192 = vmatprep.subr.bf16.mxu1 %v1214_v14 }
  0x1b   :  { %1087 = vmatpush3.bf16.msra.mxu0 %v1215_v15  ;;  %1200 = vmatpush3.bf16.msra.mxu1 %v1215_v15 }
  0x1c   :  { %1088 = vmatprep.subr.bf16.mxu0 %v1216_v16  ;;  %1193 = vmatprep.subr.bf16.mxu1 %v1216_v16 }
  0x1f   :  { %1089 = vmatpush3.bf16.msra.mxu0 %v1217_v17  ;;  %1201 = vmatpush3.bf16.msra.mxu1 %v1217_v17 }
  0x22   :  { %436 = vmatmul.mubr.bf16.vlgmr.msra.gmra.mxu0 %v1218_v18  ;;  %500 = vmatmul.mubr.bf16.vlgmr.msra.gmra.mxu1 %v1221_v19 }
  0x23   :  { %443 = vmatprep.mubr.bf16.mxu0 %v1224_v20  ;;  %507 = vmatprep.mubr.bf16.mxu1 %v1226_v21 }
  0x2a   :  { %444 = vmatmul.mubr.bf16.gmra.mxu0 %v1228_v22  ;;  %508 = vmatmul.mubr.bf16.gmra.mxu1 %v1229_v23 }
  0x2b   :  { %451 = vmatprep.mubr.bf16.mxu0 %v1230_v24  ;;  %515 = vmatprep.mubr.bf16.mxu1 %v1232_v25 }
  0x32   :  { %452 = vmatmul.mubr.bf16.gmra.mxu0 %v1234_v26  ;;  %516 = vmatmul.mubr.bf16.gmra.mxu1 %v1235_v27 }
  0x33   :  { %459 = vmatprep.mubr.bf16.mxu0 %v1236_v28  ;;  %523 = vmatprep.mubr.bf16.mxu1 %v1238_v29 }
  0x3a   :  { %460 = vmatmul.mubr.bf16.gmra.mxu0 %v1240_v30  ;;  %524 = vmatmul.mubr.bf16.gmra.mxu1 %v1241_v31 }
  0x3b   :  { %467 = vmatprep.mubr.bf16.mxu0 %v1242_v32  ;;  %531 = vmatprep.mubr.bf16.mxu1 %v1244_v33 }
  0x42   :  { %468 = vmatmul.mubr.bf16.gmra.mxu0 %v1246_v34  ;;  %532 = vmatmul.mubr.bf16.gmra.mxu1 %v1247_v35 }
  0x43   :  { %475 = vmatprep.mubr.bf16.mxu0 %v1248_v36  ;;  %539 = vmatprep.mubr.bf16.mxu1 %v1250_v37 }
  0x4a   :  { %476 = vmatmul.mubr.bf16.gmra.mxu0 %v1252_v38  ;;  %540 = vmatmul.mubr.bf16.gmra.mxu1 %v1253_v39 }
  0x4b   :  { %483 = vmatprep.mubr.bf16.mxu0 %v1254_v40  ;;  %547 = vmatprep.mubr.bf16.mxu1 %v1256_v41 }
  0x52   :  { %484 = vmatmul.mubr.bf16.gmra.mxu0 %v1258_v42  ;;  %548 = vmatmul.mubr.bf16.gmra.mxu1 %v1259_v43 }
  0x53   :  { %491 = vmatprep.mubr.bf16.mxu0 %v1260_v44  ;;  %555 = vmatprep.mubr.bf16.mxu1 %v1262_v45 }
  0x5a   :  { %492 = vmatmul.mubr.bf16.gmra.mxu0 %v1264_v46  ;;  %556 = vmatmul.mubr.bf16.gmra.mxu1 %v1265_v47 }
  0xe2   :  { %v1090_v48 = vpop.f32.mrf.mxu0  ;;  %v1138_v49 = vpop.f32.mrf.mxu1 }
  0xe4   :  { %v1091_v50 = vpop.f32.mrf.mxu0  ;;  %v1139_v51 = vpop.f32.mrf.mxu1 }
  0xe5   :  { %v1092_v54 = vadd.f32 %v1091_v50, %v1090_v48  ;;  %v1140_v55 = vadd.f32 %v1139_v51, %v1138_v49 }
  0xe6   :  { %v1093_v52 = vpop.f32.mrf.mxu0  ;;  %v1141_v53 = vpop.f32.mrf.mxu1 }
  0xe7   :  { %v670_v63 = vadd.f32 %v1092_v54, %v1433_v56  ;;  %v686_v0 = vadd.f32 %v1140_v55, %v1433_v56 }
  0xe8   :  { %v1094_v57 = vpop.f32.mrf.mxu0  ;;  %v1142_v58 = vpop.f32.mrf.mxu1 }
  0xe9   :  { %v1095_v59 = vadd.f32 %v1094_v57, %v1093_v52  ;;  %v1143_v60 = vadd.f32 %v1142_v58, %v1141_v53 }
  0xea   :  { %v1096_v61 = vpop.f32.mrf.mxu0  ;;  %v1144_v62 = vpop.f32.mrf.mxu1 }
  0xeb   :  { %v671_v1 = vadd.f32 %v1095_v59, %v1433_v56  ;;  %v687_v2 = vadd.f32 %v1143_v60, %v1433_v56 }
  0xec   :  { %v1097_v3 = vpop.f32.mrf.mxu0  ;;  %v1145_v4 = vpop.f32.mrf.mxu1 }
  0xed   :  { %v982_v5 = vpack.c.bf16 %v671_v1, %v670_v63  ;;  %v1022_v6 = vpack.c.bf16 %v687_v2, %v686_v0  ;;  %v1098_v9 = vadd.f32 %v1097_v3, %v1096_v61  ;;  %v1146_v10 = vadd.f32 %v1145_v4, %v1144_v62 }
  0xee   :  { %v1099_v7 = vpop.f32.mrf.mxu0  ;;  %v1147_v8 = vpop.f32.mrf.mxu1 }
  0xef   :  { %983 = vst [vmem:[%s1518_s3] sm:$0xff] %v982_v5   ;;  %1066 = vst [vmem:[%s1518_s3 + $0x40] sm:$0xff] %v1022_v6   ;;  %v672_v17 = vadd.f32 %v1098_v9, %v1433_v56  ;;  %v688_v18 = vadd.f32 %v1146_v10, %v1433_v56 }
  0xf0   :  { %v1100_v11 = vpop.f32.mrf.mxu0  ;;  %v1148_v12 = vpop.f32.mrf.mxu1 }
  0xf1   :  { %v1101_v13 = vadd.f32 %v1100_v11, %v1099_v7  ;;  %v1149_v14 = vadd.f32 %v1148_v12, %v1147_v8 }
  0xf2   :  { %v1102_v15 = vpop.f32.mrf.mxu0  ;;  %v1150_v16 = vpop.f32.mrf.mxu1 }
  0xf3   :  { %v673_v19 = vadd.f32 %v1101_v13, %v1433_v56  ;;  %v689_v20 = vadd.f32 %v1149_v14, %v1433_v56 }
  0xf4   :  { %v1103_v21 = vpop.f32.mrf.mxu0  ;;  %v1151_v22 = vpop.f32.mrf.mxu1 }
  0xf5   :  { %v987_v23 = vpack.c.bf16 %v673_v19, %v672_v17  ;;  %v1027_v24 = vpack.c.bf16 %v689_v20, %v688_v18  ;;  %v1104_v27 = vadd.f32 %v1103_v21, %v1102_v15  ;;  %v1152_v28 = vadd.f32 %v1151_v22, %v1150_v16 }
  0xf6   :  { %v1105_v25 = vpop.f32.mrf.mxu0  ;;  %v1153_v26 = vpop.f32.mrf.mxu1 }
  0xf7   :  { %1059 = vst [vmem:[%s1518_s3 + $0x8] sm:$0xff] %v987_v23   ;;  %1067 = vst [vmem:[%s1518_s3 + $0x48] sm:$0xff] %v1027_v24   ;;  %v674_v35 = vadd.f32 %v1104_v27, %v1433_v56  ;;  %v690_v36 = vadd.f32 %v1152_v28, %v1433_v56 }
  0xf8   :  { %v1106_v29 = vpop.f32.mrf.mxu0  ;;  %v1154_v30 = vpop.f32.mrf.mxu1 }
  0xf9   :  { %v1107_v31 = vadd.f32 %v1106_v29, %v1105_v25  ;;  %v1155_v32 = vadd.f32 %v1154_v30, %v1153_v26 }
  0xfa   :  { %v1108_v33 = vpop.f32.mrf.mxu0  ;;  %v1156_v34 = vpop.f32.mrf.mxu1 }
  0xfb   :  { %v675_v37 = vadd.f32 %v1107_v31, %v1433_v56  ;;  %v691_v38 = vadd.f32 %v1155_v32, %v1433_v56 }
  0xfc   :  { %v1109_v39 = vpop.f32.mrf.mxu0  ;;  %v1157_v40 = vpop.f32.mrf.mxu1 }
  0xfd   :  { %v992_v41 = vpack.c.bf16 %v675_v37, %v674_v35  ;;  %v1032_v42 = vpack.c.bf16 %v691_v38, %v690_v36  ;;  %v1110_v45 = vadd.f32 %v1109_v39, %v1108_v33  ;;  %v1158_v46 = vadd.f32 %v1157_v40, %v1156_v34 }
  0xfe   :  { %v1111_v43 = vpop.f32.mrf.mxu0  ;;  %v1159_v44 = vpop.f32.mrf.mxu1 }
  0xff   :  { %1060 = vst [vmem:[%s1518_s3 + $0x10] sm:$0xff] %v992_v41   ;;  %1068 = vst [vmem:[%s1518_s3 + $0x50] sm:$0xff] %v1032_v42   ;;  %v676_v53 = vadd.f32 %v1110_v45, %v1433_v56  ;;  %v692_v54 = vadd.f32 %v1158_v46, %v1433_v56 }
 0x100   :  { %v1112_v47 = vpop.f32.mrf.mxu0  ;;  %v1160_v48 = vpop.f32.mrf.mxu1 }
 0x101   :  { %v1113_v49 = vadd.f32 %v1112_v47, %v1111_v43  ;;  %v1161_v50 = vadd.f32 %v1160_v48, %v1159_v44 }
 0x102   :  { %v1114_v51 = vpop.f32.mrf.mxu0  ;;  %v1162_v52 = vpop.f32.mrf.mxu1 }
 0x103   :  { %v677_v55 = vadd.f32 %v1113_v49, %v1433_v56  ;;  %v693_v57 = vadd.f32 %v1161_v50, %v1433_v56 }
 0x104   :  { %v1115_v58 = vpop.f32.mrf.mxu0  ;;  %v1163_v59 = vpop.f32.mrf.mxu1 }
 0x105   :  { %v997_v60 = vpack.c.bf16 %v677_v55, %v676_v53  ;;  %v1037_v61 = vpack.c.bf16 %v693_v57, %v692_v54  ;;  %v1116_v0 = vadd.f32 %v1115_v58, %v1114_v51  ;;  %v1164_v1 = vadd.f32 %v1163_v59, %v1162_v52 }
 0x106   :  { %v1117_v62 = vpop.f32.mrf.mxu0  ;;  %v1165_v63 = vpop.f32.mrf.mxu1 }
 0x107   :  { %1061 = vst [vmem:[%s1518_s3 + $0x18] sm:$0xff] %v997_v60   ;;  %1069 = vst [vmem:[%s1518_s3 + $0x58] sm:$0xff] %v1037_v61   ;;  %v678_v8 = vadd.f32 %v1116_v0, %v1433_v56  ;;  %v694_v9 = vadd.f32 %v1164_v1, %v1433_v56 }
 0x108   :  { %v1118_v2 = vpop.f32.mrf.mxu0  ;;  %v1166_v3 = vpop.f32.mrf.mxu1 }
 0x109   :  { %v1119_v4 = vadd.f32 %v1118_v2, %v1117_v62  ;;  %v1167_v5 = vadd.f32 %v1166_v3, %v1165_v63 }
 0x10a   :  { %v1120_v6 = vpop.f32.mrf.mxu0  ;;  %v1168_v7 = vpop.f32.mrf.mxu1 }
 0x10b   :  { %v679_v10 = vadd.f32 %v1119_v4, %v1433_v56  ;;  %v695_v11 = vadd.f32 %v1167_v5, %v1433_v56 }
 0x10c   :  { %v1121_v12 = vpop.f32.mrf.mxu0  ;;  %v1169_v13 = vpop.f32.mrf.mxu1 }
 0x10d   :  { %v1002_v14 = vpack.c.bf16 %v679_v10, %v678_v8  ;;  %v1042_v15 = vpack.c.bf16 %v695_v11, %v694_v9  ;;  %v1122_v18 = vadd.f32 %v1121_v12, %v1120_v6  ;;  %v1170_v19 = vadd.f32 %v1169_v13, %v1168_v7 }
 0x10e   :  { %v1123_v16 = vpop.f32.mrf.mxu0  ;;  %v1171_v17 = vpop.f32.mrf.mxu1 }
 0x10f   :  { %1062 = vst [vmem:[%s1518_s3 + $0x20] sm:$0xff] %v1002_v14   ;;  %1070 = vst [vmem:[%s1518_s3 + $0x60] sm:$0xff] %v1042_v15   ;;  %v680_v26 = vadd.f32 %v1122_v18, %v1433_v56  ;;  %v696_v27 = vadd.f32 %v1170_v19, %v1433_v56 }
 0x110   :  { %v1124_v20 = vpop.f32.mrf.mxu0  ;;  %v1172_v21 = vpop.f32.mrf.mxu1 }
 0x111   :  { %v1125_v22 = vadd.f32 %v1124_v20, %v1123_v16  ;;  %v1173_v23 = vadd.f32 %v1172_v21, %v1171_v17 }
 0x112   :  { %v1126_v24 = vpop.f32.mrf.mxu0  ;;  %v1174_v25 = vpop.f32.mrf.mxu1 }
 0x113   :  { %v681_v28 = vadd.f32 %v1125_v22, %v1433_v56  ;;  %v697_v29 = vadd.f32 %v1173_v23, %v1433_v56 }
 0x114   :  { %v1127_v30 = vpop.f32.mrf.mxu0  ;;  %v1175_v31 = vpop.f32.mrf.mxu1 }
 0x115   :  { %v1007_v32 = vpack.c.bf16 %v681_v28, %v680_v26  ;;  %v1047_v33 = vpack.c.bf16 %v697_v29, %v696_v27  ;;  %v1128_v36 = vadd.f32 %v1127_v30, %v1126_v24  ;;  %v1176_v37 = vadd.f32 %v1175_v31, %v1174_v25 }
 0x116   :  { %v1129_v34 = vpop.f32.mrf.mxu0  ;;  %v1177_v35 = vpop.f32.mrf.mxu1 }
 0x117   :  { %1063 = vst [vmem:[%s1518_s3 + $0x28] sm:$0xff] %v1007_v32   ;;  %1071 = vst [vmem:[%s1518_s3 + $0x68] sm:$0xff] %v1047_v33   ;;  %v682_v44 = vadd.f32 %v1128_v36, %v1433_v56  ;;  %v698_v45 = vadd.f32 %v1176_v37, %v1433_v56 }
 0x118   :  { %v1130_v38 = vpop.f32.mrf.mxu0  ;;  %v1178_v39 = vpop.f32.mrf.mxu1 }
 0x119   :  { %v1131_v40 = vadd.f32 %v1130_v38, %v1129_v34  ;;  %v1179_v41 = vadd.f32 %v1178_v39, %v1177_v35 }
 0x11a   :  { %v1132_v42 = vpop.f32.mrf.mxu0  ;;  %v1180_v43 = vpop.f32.mrf.mxu1 }
 0x11b   :  { %v683_v46 = vadd.f32 %v1131_v40, %v1433_v56  ;;  %v699_v47 = vadd.f32 %v1179_v41, %v1433_v56 }
 0x11c   :  { %v1133_v48 = vpop.f32.mrf.mxu0  ;;  %v1181_v49 = vpop.f32.mrf.mxu1 }
 0x11d   :  { %v1012_v50 = vpack.c.bf16 %v683_v46, %v682_v44  ;;  %v1052_v51 = vpack.c.bf16 %v699_v47, %v698_v45  ;;  %v1134_v54 = vadd.f32 %v1133_v48, %v1132_v42  ;;  %v1182_v55 = vadd.f32 %v1181_v49, %v1180_v43 }
 0x11e   :  { %v1135_v52 = vpop.f32.mrf.mxu0  ;;  %v1183_v53 = vpop.f32.mrf.mxu1 }
 0x11f   :  { %1064 = vst [vmem:[%s1518_s3 + $0x30] sm:$0xff] %v1012_v50   ;;  %1072 = vst [vmem:[%s1518_s3 + $0x70] sm:$0xff] %v1052_v51   ;;  %v684_v61 = vadd.f32 %v1134_v54, %v1433_v56  ;;  %v700_v62 = vadd.f32 %v1182_v55, %v1433_v56 }
 0x120   :  { %v1136_v57 = vpop.f32.mrf.mxu0  ;;  %v1184_v58 = vpop.f32.mrf.mxu1 }
 0x121   :  { %v1137_v59 = vadd.f32 %v1136_v57, %v1135_v52  ;;  %v1185_v60 = vadd.f32 %v1184_v58, %v1183_v53 }
 0x123   :  { %v685_v63 = vadd.f32 %v1137_v59, %v1433_v56  ;;  %v701_v0 = vadd.f32 %v1185_v60, %v1433_v56 }
 0x125   :  { %v1017_v1 = vpack.c.bf16 %v685_v63, %v684_v61  ;;  %v1057_v2 = vpack.c.bf16 %v701_v0, %v700_v62 }
 0x127   :  { %1065 = vst [vmem:[%s1518_s3 + $0x38] sm:$0xff] %v1017_v1   ;;  %1073 = vst [vmem:[%s1518_s3 + $0x78] sm:$0xff] %v1057_v2  }

// kernel: gnn_autoencoder_pallas.4
= control target key start
LH: loop header
LB: loop body
LE: loop exit
PB: predicated region body
PF: predicated region fallthrough
CT: control target
= control target key end

     0   :  { %s2221_s1 = inlined_call_operand.vmem [shape: bf16[256,128], index: 1, kind: input, shape index: {}]   ;;  %s2222_s0 = inlined_call_operand.vmem [shape: bf16[256,256], index: 0, kind: input, shape index: {}]   ;;  %s2223_s2 = inlined_call_operand.vmem [shape: bf16[128,128], index: 2, kind: input, shape index: {}]   ;;  %s2224_s4 = inlined_call_operand.vmem [shape: bf16[128,128], index: 4, kind: input, shape index: {}]   ;;  %s2225_s3 = inlined_call_operand.vmem [shape: f32[1,128], index: 3, kind: input, shape index: {}]   ;;  %s2226_s5 = inlined_call_operand.vmem [shape: bf16[256,128], index: 5, kind: output, shape index: {}]  }
   0x1   :  { %v1834_v0 = vld [vmem:[%s2221_s1 + $0x78] sm:$0xff]   ;;  %v1836_v2 = vld [vmem:[%s2221_s1 + $0x70] sm:$0xff]   ;;  %v1838_v4 = vld [vmem:[%s2221_s1 + $0x68] sm:$0xff]  }
   0x2   :  { %v1835_v1 = vld [vmem:[%s2221_s1 + $0x38] sm:$0xff]   ;;  %1578 = vmatprep.subr.bf16.mxu0 %v1834_v0  ;;  %v1837_v3 = vld [vmem:[%s2221_s1 + $0x30] sm:$0xff]   ;;  %v1839_v5 = vld [vmem:[%s2221_s1 + $0x28] sm:$0xff]  }
   0x3   :  { %1579 = vmatpush3.bf16.msra.mxu0 %v1835_v1  ;;  %v1840_v6 = vld [vmem:[%s2221_s1 + $0x60] sm:$0xff]   ;;  %v1842_v8 = vld [vmem:[%s2221_s1 + $0x58] sm:$0xff]   ;;  %v1844_v10 = vld [vmem:[%s2221_s1 + $0x50] sm:$0xff]  }
   0x4   :  { %1580 = vmatprep.subr.bf16.mxu0 %v1836_v2  ;;  %v1841_v7 = vld [vmem:[%s2221_s1 + $0x20] sm:$0xff]   ;;  %v1843_v9 = vld [vmem:[%s2221_s1 + $0x18] sm:$0xff]   ;;  %v1845_v12 = vld [vmem:[%s2221_s1 + $0x10] sm:$0xff]  }
   0x5   :  { %v1852_v11 = vld [vmem:[%s2222_s0 + $0x4] ss:$8 sps:$4 sm:$0xff]   ;;  %v1850_v17 = vld [vmem:[%s2222_s0] ss:$8 sps:$4 sm:$0xff]   ;;  %v1853_v18 = vld [vmem:[%s2222_s0 + $0x14] ss:$8 sps:$4 sm:$0xff]  }
   0x6   :  { %441 = vmatprep.mubr.bf16.mxu0 %v1852_v11  ;;  %v1846_v13 = vld [vmem:[%s2221_s1 + $0x48] sm:$0xff]   ;;  %v1848_v15 = vld [vmem:[%s2221_s1 + $0x40] sm:$0xff]   ;;  %v1855_v19 = vld [vmem:[%s2222_s0 + $0x10] ss:$8 sps:$4 sm:$0xff]  }
   0x7   :  { %1581 = vmatpush3.bf16.msra.mxu0 %v1837_v3  ;;  %v1847_v14 = vld [vmem:[%s2221_s1 + $0x8] sm:$0xff]   ;;  %v1849_v16 = vld [vmem:[%s2221_s1] sm:$0xff]   ;;  %v1898_v21 = vld [vmem:[%s2223_s2 + $0x38] sm:$0xff]  }
   0x8   :  { %1582 = vmatprep.subr.bf16.mxu0 %v1838_v4  ;;  %v1856_v20 = vld [vmem:[%s2222_s0 + $0x24] ss:$8 sps:$4 sm:$0xff]   ;;  %v1899_v22 = vld [vmem:[%s2223_s2 + $0x30] sm:$0xff]   ;;  %1738 = vmatprep.subr.bf16.mxu1 %v1898_v21  ;;  %v1858_v24 = vld [vmem:[%s2222_s0 + $0x20] ss:$8 sps:$4 sm:$0xff]  }
   0x9   :  { %1739 = vmatpush3.bf16.msra.mxu1 %v1898_v21  ;;  %v1900_v23 = vld [vmem:[%s2223_s2 + $0x28] sm:$0xff]   ;;  %v1901_v25 = vld [vmem:[%s2223_s2 + $0x20] sm:$0xff]   ;;  %v1859_v26 = vld [vmem:[%s2222_s0 + $0x34] ss:$8 sps:$4 sm:$0xff]  }
   0xa   :  { %1740 = vmatprep.subr.bf16.mxu1 %v1899_v22  ;;  %v1861_v27 = vld [vmem:[%s2222_s0 + $0x30] ss:$8 sps:$4 sm:$0xff]   ;;  %v1862_v28 = vld [vmem:[%s2222_s0 + $0x44] ss:$8 sps:$4 sm:$0xff]   ;;  %v1864_v29 = vld [vmem:[%s2222_s0 + $0x40] ss:$8 sps:$4 sm:$0xff]  }
   0xb   :  { %1583 = vmatpush3.bf16.msra.mxu0 %v1839_v5  ;;  %v1865_v30 = vld [vmem:[%s2222_s0 + $0x54] ss:$8 sps:$4 sm:$0xff]   ;;  %v1867_v31 = vld [vmem:[%s2222_s0 + $0x50] ss:$8 sps:$4 sm:$0xff]   ;;  %v1868_v32 = vld [vmem:[%s2222_s0 + $0x64] ss:$8 sps:$4 sm:$0xff]  }
   0xc   :  { %1584 = vmatprep.subr.bf16.mxu0 %v1840_v6  ;;  %v1870_v33 = vld [vmem:[%s2222_s0 + $0x60] ss:$8 sps:$4 sm:$0xff]   ;;  %v1871_v34 = vld [vmem:[%s2222_s0 + $0x74] ss:$8 sps:$4 sm:$0xff]   ;;  %v1873_v35 = vld [vmem:[%s2222_s0 + $0x70] ss:$8 sps:$4 sm:$0xff]  }
   0xd   :  { %1741 = vmatpush3.bf16.msra.mxu1 %v1899_v22  ;;  %v1874_v36 = vld [vmem:[%s2222_s0 + $0x84] ss:$8 sps:$4 sm:$0xff]   ;;  %v1876_v37 = vld [vmem:[%s2222_s0 + $0x80] ss:$8 sps:$4 sm:$0xff]   ;;  %v1877_v38 = vld [vmem:[%s2222_s0 + $0x94] ss:$8 sps:$4 sm:$0xff]  }
   0xe   :  { %1742 = vmatprep.subr.bf16.mxu1 %v1900_v23  ;;  %v1902_v39 = vld [vmem:[%s2223_s2 + $0x18] sm:$0xff]   ;;  %v1880_v41 = vld [vmem:[%s2222_s0 + $0xa4] ss:$8 sps:$4 sm:$0xff]   ;;  %v1903_v42 = vld [vmem:[%s2223_s2 + $0x10] sm:$0xff]  }
   0xf   :  { %1585 = vmatpush3.bf16.msra.mxu0 %v1841_v7  ;;  %v1879_v40 = vld [vmem:[%s2222_s0 + $0x90] ss:$8 sps:$4 sm:$0xff]   ;;  %v1904_v43 = vld [vmem:[%s2223_s2 + $0x8] sm:$0xff]   ;;  %v1883_v45 = vld [vmem:[%s2222_s0 + $0xb4] ss:$8 sps:$4 sm:$0xff]  }
  0x10   :  { %1586 = vmatprep.subr.bf16.mxu0 %v1842_v8  ;;  %v1882_v44 = vld [vmem:[%s2222_s0 + $0xa0] ss:$8 sps:$4 sm:$0xff]   ;;  %v1885_v47 = vld [vmem:[%s2222_s0 + $0xb0] ss:$8 sps:$4 sm:$0xff]   ;;  %v1886_v48 = vld [vmem:[%s2222_s0 + $0xc4] ss:$8 sps:$4 sm:$0xff]  }
  0x11   :  { %1743 = vmatpush3.bf16.msra.mxu1 %v1900_v23  ;;  %v1905_v46 = vld [vmem:[%s2223_s2] sm:$0xff]   ;;  %v1889_v50 = vld [vmem:[%s2222_s0 + $0xd4] ss:$8 sps:$4 sm:$0xff]   ;;  %v1891_v51 = vld [vmem:[%s2222_s0 + $0xd0] ss:$8 sps:$4 sm:$0xff]  }
  0x12   :  { %1744 = vmatprep.subr.bf16.mxu1 %v1901_v25  ;;  %v1888_v49 = vld [vmem:[%s2222_s0 + $0xc0] ss:$8 sps:$4 sm:$0xff]   ;;  %v1892_v52 = vld [vmem:[%s2222_s0 + $0xe4] ss:$8 sps:$4 sm:$0xff]   ;;  %v1895_v54 = vld [vmem:[%s2222_s0 + $0xf4] ss:$8 sps:$4 sm:$0xff]  }
  0x13   :  { %1587 = vmatpush3.bf16.msra.mxu0 %v1843_v9  ;;  %v1894_v53 = vld [vmem:[%s2222_s0 + $0xe0] ss:$8 sps:$4 sm:$0xff]   ;;  %v1897_v55 = vld [vmem:[%s2222_s0 + $0xf0] ss:$8 sps:$4 sm:$0xff]  }
  0x14   :  { %1588 = vmatprep.subr.bf16.mxu0 %v1844_v10  ;;  %v1906_v59 = vld [vmem:[%s2224_s4 + $0x38] sm:$0xff]   ;;  %v1907_v8 = vld [vmem:[%s2224_s4 + $0x30] sm:$0xff]   ;;  %v1908_v11 = vld [vmem:[%s2224_s4 + $0x28] sm:$0xff]  }
  0x15   :  { %1745 = vmatpush3.bf16.msra.mxu1 %v1901_v25 }
  0x16   :  { %1746 = vmatprep.subr.bf16.mxu1 %v1902_v39 }
  0x17   :  { %1589 = vmatpush3.bf16.msra.mxu0 %v1845_v12 }
  0x18   :  { %1590 = vmatprep.subr.bf16.mxu0 %v1846_v13 }
  0x19   :  { %1747 = vmatpush3.bf16.msra.mxu1 %v1902_v39 }
  0x1a   :  { %1748 = vmatprep.subr.bf16.mxu1 %v1903_v42 }
  0x1b   :  { %1591 = vmatpush3.bf16.msra.mxu0 %v1847_v14 }
  0x1c   :  { %1592 = vmatprep.subr.bf16.mxu0 %v1848_v15 }
  0x1d   :  { %1749 = vmatpush3.bf16.msra.mxu1 %v1903_v42 }
  0x1e   :  { %1750 = vmatprep.subr.bf16.mxu1 %v1904_v43 }
  0x1f   :  { %1593 = vmatpush3.bf16.msra.mxu0 %v1849_v16 }
  0x21   :  { %1751 = vmatpush3.bf16.msra.mxu1 %v1904_v43 }
  0x22   :  { %442 = vmatmul.mubr.bf16.vlgmr.msra.gmra.mxu0 %v1850_v17  ;;  %1752 = vmatprep.subr.bf16.mxu1 %v1905_v46  ;;  %v1909_v17 = vld [vmem:[%s2224_s4 + $0x20] sm:$0xff]  }
  0x23   :  { %449 = vmatprep.mubr.bf16.mxu0 %v1853_v18 }
  0x25   :  { %1753 = vmatpush3.bf16.msra.mxu1 %v1905_v46 }
  0x26   :  { %1786 = vmatprep.subr.bf16.mxu1 %v1906_v59 }
  0x2a   :  { %450 = vmatmul.mubr.bf16.gmra.mxu0 %v1855_v19 }
  0x2b   :  { %457 = vmatprep.mubr.bf16.mxu0 %v1856_v20  ;;  %v1910_v20 = vld [vmem:[%s2224_s4 + $0x18] sm:$0xff]  }
  0x32   :  { %458 = vmatmul.mubr.bf16.gmra.mxu0 %v1858_v24 }
  0x33   :  { %465 = vmatprep.mubr.bf16.mxu0 %v1859_v26 }
  0x3a   :  { %466 = vmatmul.mubr.bf16.gmra.mxu0 %v1861_v27 }
  0x3b   :  { %473 = vmatprep.mubr.bf16.mxu0 %v1862_v28 }
  0x42   :  { %474 = vmatmul.mubr.bf16.gmra.mxu0 %v1864_v29 }
  0x43   :  { %481 = vmatprep.mubr.bf16.mxu0 %v1865_v30 }
  0x4a   :  { %482 = vmatmul.mubr.bf16.gmra.mxu0 %v1867_v31 }
  0x4b   :  { %489 = vmatprep.mubr.bf16.mxu0 %v1868_v32 }
  0x52   :  { %490 = vmatmul.mubr.bf16.gmra.mxu0 %v1870_v33 }
  0x53   :  { %497 = vmatprep.mubr.bf16.mxu0 %v1871_v34 }
  0x5a   :  { %498 = vmatmul.mubr.bf16.gmra.mxu0 %v1873_v35 }
  0x5b   :  { %505 = vmatprep.mubr.bf16.mxu0 %v1874_v36 }
  0x62   :  { %506 = vmatmul.mubr.bf16.gmra.mxu0 %v1876_v37 }
  0x63   :  { %513 = vmatprep.mubr.bf16.mxu0 %v1877_v38 }
  0x6a   :  { %514 = vmatmul.mubr.bf16.gmra.mxu0 %v1879_v40 }
  0x6b   :  { %521 = vmatprep.mubr.bf16.mxu0 %v1880_v41 }
  0x72   :  { %522 = vmatmul.mubr.bf16.gmra.mxu0 %v1882_v44 }
  0x73   :  { %529 = vmatprep.mubr.bf16.mxu0 %v1883_v45 }
  0x7a   :  { %530 = vmatmul.mubr.bf16.gmra.mxu0 %v1885_v47 }
  0x7b   :  { %537 = vmatprep.mubr.bf16.mxu0 %v1886_v48 }
  0x82   :  { %538 = vmatmul.mubr.bf16.gmra.mxu0 %v1888_v49 }
  0x83   :  { %545 = vmatprep.mubr.bf16.mxu0 %v1889_v50 }
  0x8a   :  { %546 = vmatmul.mubr.bf16.gmra.mxu0 %v1891_v51 }
  0x8b   :  { %553 = vmatprep.mubr.bf16.mxu0 %v1892_v52 }
  0x92   :  { %554 = vmatmul.mubr.bf16.gmra.mxu0 %v1894_v53 }
  0x93   :  { %561 = vmatprep.mubr.bf16.mxu0 %v1895_v54 }
  0x9a   :  { %562 = vmatmul.mubr.bf16.gmra.mxu0 %v1897_v55 }
  0xe2   :  { %v1594_v56 = vpop.f32.mrf.mxu0 }
  0xe4   :  { %v1595_v57 = vpop.f32.mrf.mxu0 }
  0xe5   :  { %v1596_v61 = vadd.f32 %v1595_v57, %v1594_v56 }
  0xe6   :  { %v1597_v58 = vpop.f32.mrf.mxu0 }
  0xe8   :  { %v1598_v60 = vpop.f32.mrf.mxu0 }
  0xe9   :  { %v1599_v62 = vadd.f32 %v1598_v60, %v1597_v58 }
  0xea   :  { %v1600_v63 = vpop.f32.mrf.mxu0 }
  0xeb   :  { %v669_v0 = vpack.c.bf16 %v1599_v62, %v1596_v61 }
  0xec   :  { %v1601_v1 = vpop.f32.mrf.mxu0 }
  0xed   :  { %1754 = vmatprep.mubr.bf16.mxu1 %v669_v0  ;;  %v1602_v4 = vadd.f32 %v1601_v1, %v1600_v63 }
  0xee   :  { %v1603_v2 = vpop.f32.mrf.mxu0 }
  0xf0   :  { %v1604_v3 = vpop.f32.mrf.mxu0 }
  0xf1   :  { %v1605_v5 = vadd.f32 %v1604_v3, %v1603_v2 }
  0xf2   :  { %v1606_v6 = vpop.f32.mrf.mxu0 }
  0xf3   :  { %v670_v7 = vpack.c.bf16 %v1605_v5, %v1602_v4  ;;  %v1911_v5 = vld [vmem:[%s2224_s4 + $0x10] sm:$0xff]  }
  0xf4   :  { %v1607_v9 = vpop.f32.mrf.mxu0 }
  0xf5   :  { %1755 = vmatmul.mubr.bf16.vlgmr.msra.gmra.mxu1 %v670_v7  ;;  %v1608_v13 = vadd.f32 %v1607_v9, %v1606_v6 }
  0xf6   :  { %v1609_v10 = vpop.f32.mrf.mxu0  ;;  %1787 = vmatpush3.bf16.msra.mxu1 %v1906_v59 }
  0xf7   :  { %1788 = vmatprep.subr.bf16.mxu1 %v1907_v8 }
  0xf8   :  { %v1610_v12 = vpop.f32.mrf.mxu0 }
  0xf9   :  { %v1611_v14 = vadd.f32 %v1610_v12, %v1609_v10  ;;  %v1912_v10 = vld [vmem:[%s2224_s4 + $0x8] sm:$0xff]  }
  0xfa   :  { %v1612_v15 = vpop.f32.mrf.mxu0  ;;  %1789 = vmatpush3.bf16.msra.mxu1 %v1907_v8 }
  0xfb   :  { %v671_v16 = vpack.c.bf16 %v1611_v14, %v1608_v13  ;;  %1790 = vmatprep.subr.bf16.mxu1 %v1908_v11  ;;  %v1913_v14 = vld [vmem:[%s2224_s4] sm:$0xff]  }
  0xfc   :  { %v1613_v18 = vpop.f32.mrf.mxu0 }
  0xfd   :  { %1758 = vmatprep.mubr.bf16.mxu1 %v671_v16  ;;  %v1614_v22 = vadd.f32 %v1613_v18, %v1612_v15 }
  0xfe   :  { %v1615_v19 = vpop.f32.mrf.mxu0  ;;  %1791 = vmatpush3.bf16.msra.mxu1 %v1908_v11 }
  0xff   :  { %1792 = vmatprep.subr.bf16.mxu1 %v1909_v17 }
 0x100   :  { %v1616_v21 = vpop.f32.mrf.mxu0 }
 0x101   :  { %v1617_v23 = vadd.f32 %v1616_v21, %v1615_v19 }
 0x102   :  { %v1618_v24 = vpop.f32.mrf.mxu0  ;;  %1793 = vmatpush3.bf16.msra.mxu1 %v1909_v17 }
 0x103   :  { %v672_v25 = vpack.c.bf16 %v1617_v23, %v1614_v22  ;;  %1794 = vmatprep.subr.bf16.mxu1 %v1910_v20 }
 0x104   :  { %v1619_v26 = vpop.f32.mrf.mxu0 }
 0x105   :  { %1759 = vmatmul.mubr.bf16.gmra.mxu1 %v672_v25  ;;  %v1620_v29 = vadd.f32 %v1619_v26, %v1618_v24 }
 0x106   :  { %v1621_v27 = vpop.f32.mrf.mxu0  ;;  %1795 = vmatpush3.bf16.msra.mxu1 %v1910_v20 }
 0x107   :  { %1796 = vmatprep.subr.bf16.mxu1 %v1911_v5 }
 0x108   :  { %v1622_v28 = vpop.f32.mrf.mxu0 }
 0x109   :  { %v1623_v30 = vadd.f32 %v1622_v28, %v1621_v27 }
 0x10a   :  { %v1624_v31 = vpop.f32.mrf.mxu0  ;;  %1797 = vmatpush3.bf16.msra.mxu1 %v1911_v5 }
 0x10b   :  { %v673_v32 = vpack.c.bf16 %v1623_v30, %v1620_v29  ;;  %1798 = vmatprep.subr.bf16.mxu1 %v1912_v10 }
 0x10c   :  { %v1625_v33 = vpop.f32.mrf.mxu0 }
 0x10d   :  { %1762 = vmatprep.mubr.bf16.mxu1 %v673_v32  ;;  %v1626_v36 = vadd.f32 %v1625_v33, %v1624_v31 }
 0x10e   :  { %v1627_v34 = vpop.f32.mrf.mxu0  ;;  %1799 = vmatpush3.bf16.msra.mxu1 %v1912_v10 }
 0x10f   :  { %1800 = vmatprep.subr.bf16.mxu1 %v1913_v14 }
 0x110   :  { %v1628_v35 = vpop.f32.mrf.mxu0 }
 0x111   :  { %v1629_v37 = vadd.f32 %v1628_v35, %v1627_v34 }
 0x112   :  { %v1630_v38 = vpop.f32.mrf.mxu0  ;;  %1801 = vmatpush3.bf16.msra.mxu1 %v1913_v14 }
 0x113   :  { %v674_v39 = vpack.c.bf16 %v1629_v37, %v1626_v36 }
 0x114   :  { %v1631_v40 = vpop.f32.mrf.mxu0 }
 0x115   :  { %1763 = vmatmul.mubr.bf16.gmra.mxu1 %v674_v39  ;;  %v1632_v43 = vadd.f32 %v1631_v40, %v1630_v38 }
 0x116   :  { %v1633_v41 = vpop.f32.mrf.mxu0 }
 0x118   :  { %v1634_v42 = vpop.f32.mrf.mxu0 }
 0x119   :  { %v1635_v44 = vadd.f32 %v1634_v42, %v1633_v41 }
 0x11a   :  { %v1636_v45 = vpop.f32.mrf.mxu0 }
 0x11b   :  { %v675_v46 = vpack.c.bf16 %v1635_v44, %v1632_v43 }
 0x11c   :  { %v1637_v47 = vpop.f32.mrf.mxu0 }
 0x11d   :  { %1766 = vmatprep.mubr.bf16.mxu1 %v675_v46  ;;  %v1638_v50 = vadd.f32 %v1637_v47, %v1636_v45 }
 0x11e   :  { %v1639_v48 = vpop.f32.mrf.mxu0 }
 0x120   :  { %v1640_v49 = vpop.f32.mrf.mxu0 }
 0x121   :  { %v1641_v51 = vadd.f32 %v1640_v49, %v1639_v48 }
 0x122   :  { %v1642_v52 = vpop.f32.mrf.mxu0 }
 0x123   :  { %v676_v53 = vpack.c.bf16 %v1641_v51, %v1638_v50  ;;  %v2139_v50 = vld [vmem:[%s2225_s3] ss:$0 sm:$0xff] }
 0x124   :  { %v1643_v54 = vpop.f32.mrf.mxu0 }
 0x125   :  { %1767 = vmatmul.mubr.bf16.gmra.mxu1 %v676_v53  ;;  %v1644_v57 = vadd.f32 %v1643_v54, %v1642_v52 }
 0x126   :  { %v1645_v55 = vpop.f32.mrf.mxu0 }
 0x128   :  { %v1646_v56 = vpop.f32.mrf.mxu0 }
 0x129   :  { %v1647_v58 = vadd.f32 %v1646_v56, %v1645_v55 }
 0x12a   :  { %v1648_v59 = vpop.f32.mrf.mxu0 }
 0x12b   :  { %v677_v60 = vpack.c.bf16 %v1647_v58, %v1644_v57 }
 0x12c   :  { %v1649_v61 = vpop.f32.mrf.mxu0 }
 0x12d   :  { %1770 = vmatprep.mubr.bf16.mxu1 %v677_v60  ;;  %v1650_v0 = vadd.f32 %v1649_v61, %v1648_v59 }
 0x12e   :  { %v1651_v62 = vpop.f32.mrf.mxu0 }
 0x130   :  { %v1652_v63 = vpop.f32.mrf.mxu0 }
 0x131   :  { %v1653_v1 = vadd.f32 %v1652_v63, %v1651_v62 }
 0x132   :  { %v1654_v2 = vpop.f32.mrf.mxu0 }
 0x133   :  { %v678_v3 = vpack.c.bf16 %v1653_v1, %v1650_v0 }
 0x134   :  { %v1655_v4 = vpop.f32.mrf.mxu0 }
 0x135   :  { %1771 = vmatmul.mubr.bf16.gmra.mxu1 %v678_v3  ;;  %v1656_v8 = vadd.f32 %v1655_v4, %v1654_v2 }
 0x136   :  { %v1657_v6 = vpop.f32.mrf.mxu0 }
 0x138   :  { %v1658_v7 = vpop.f32.mrf.mxu0 }
 0x139   :  { %v1659_v9 = vadd.f32 %v1658_v7, %v1657_v6 }
 0x13a   :  { %v1660_v11 = vpop.f32.mrf.mxu0 }
 0x13b   :  { %v679_v12 = vpack.c.bf16 %v1659_v9, %v1656_v8 }
 0x13c   :  { %v1661_v13 = vpop.f32.mrf.mxu0 }
 0x13d   :  { %1774 = vmatprep.mubr.bf16.mxu1 %v679_v12  ;;  %v1662_v17 = vadd.f32 %v1661_v13, %v1660_v11 }
 0x13e   :  { %v1663_v15 = vpop.f32.mrf.mxu0 }
 0x140   :  { %v1664_v16 = vpop.f32.mrf.mxu0 }
 0x141   :  { %v1665_v18 = vadd.f32 %v1664_v16, %v1663_v15 }
 0x142   :  { %v1666_v19 = vpop.f32.mrf.mxu0 }
 0x143   :  { %v680_v20 = vpack.c.bf16 %v1665_v18, %v1662_v17 }
 0x144   :  { %v1667_v21 = vpop.f32.mrf.mxu0 }
 0x145   :  { %1775 = vmatmul.mubr.bf16.gmra.mxu1 %v680_v20  ;;  %v1668_v24 = vadd.f32 %v1667_v21, %v1666_v19 }
 0x146   :  { %v1669_v22 = vpop.f32.mrf.mxu0 }
 0x148   :  { %v1670_v23 = vpop.f32.mrf.mxu0 }
 0x149   :  { %v1671_v25 = vadd.f32 %v1670_v23, %v1669_v22 }
 0x14a   :  { %v1672_v26 = vpop.f32.mrf.mxu0 }
 0x14b   :  { %v681_v27 = vpack.c.bf16 %v1671_v25, %v1668_v24 }
 0x14c   :  { %v1673_v28 = vpop.f32.mrf.mxu0 }
 0x14d   :  { %1778 = vmatprep.mubr.bf16.mxu1 %v681_v27  ;;  %v1674_v31 = vadd.f32 %v1673_v28, %v1672_v26 }
 0x14e   :  { %v1675_v29 = vpop.f32.mrf.mxu0 }
 0x150   :  { %v1676_v30 = vpop.f32.mrf.mxu0 }
 0x151   :  { %v1677_v32 = vadd.f32 %v1676_v30, %v1675_v29 }
 0x152   :  { %v1678_v33 = vpop.f32.mrf.mxu0 }
 0x153   :  { %v682_v34 = vpack.c.bf16 %v1677_v32, %v1674_v31 }
 0x154   :  { %v1679_v35 = vpop.f32.mrf.mxu0 }
 0x155   :  { %1779 = vmatmul.mubr.bf16.gmra.mxu1 %v682_v34  ;;  %v1680_v38 = vadd.f32 %v1679_v35, %v1678_v33 }
 0x156   :  { %v1681_v36 = vpop.f32.mrf.mxu0 }
 0x158   :  { %v1682_v37 = vpop.f32.mrf.mxu0 }
 0x159   :  { %v1683_v39 = vadd.f32 %v1682_v37, %v1681_v36 }
 0x15a   :  { %v1684_v40 = vpop.f32.mrf.mxu0 }
 0x15b   :  { %v683_v41 = vpack.c.bf16 %v1683_v39, %v1680_v38 }
 0x15c   :  { %v1685_v42 = vpop.f32.mrf.mxu0 }
 0x15d   :  { %1782 = vmatprep.mubr.bf16.mxu1 %v683_v41  ;;  %v1686_v45 = vadd.f32 %v1685_v42, %v1684_v40 }
 0x15e   :  { %v1687_v43 = vpop.f32.mrf.mxu0 }
 0x160   :  { %v1688_v44 = vpop.f32.mrf.mxu0 }
 0x161   :  { %v1689_v46 = vadd.f32 %v1688_v44, %v1687_v43 }
 0x163   :  { %v684_v47 = vpack.c.bf16 %v1689_v46, %v1686_v45 }
 0x165   :  { %1783 = vmatmul.mubr.bf16.gmra.mxu1 %v684_v47 }
 0x1b5   :  { %v1756_v48 = vpop.f32.mrf.mxu1 }
 0x1b6   :  { %v799_v54 = vadd.f32 %v1756_v48, %v2139_v50 }
 0x1b7   :  { %v790_v49 = vpop.f32.mrf.mxu1 }
 0x1b8   :  { %v791_v52 = vadd.f32 %v2139_v50, %v790_v49  ;;  %v919_v60 = vmax.f32 %v799_v54, 0.0 }
 0x1b9   :  { %v1757_v51 = vpop.f32.mrf.mxu1 }
 0x1ba   :  { %v802_v53 = vadd.f32 %v1757_v51, %v2139_v50  ;;  %v917_v58 = vmax.f32 %v791_v52, 0.0 }
 0x1bb   :  { %v793_v55 = vpop.f32.mrf.mxu1 }
 0x1bc   :  { %v794_v56 = vadd.f32 %v2139_v50, %v793_v55  ;;  %v920_v57 = vmax.f32 %v802_v53, 0.0 }
 0x1be   :  { %v918_v59 = vmax.f32 %v794_v56, 0.0  ;;  %v950_v62 = vpack.c.bf16 %v920_v57, %v919_v60 }
 0x1c0   :  { %v949_v61 = vpack.c.bf16 %v918_v59, %v917_v58 }
 0x1c2   :  { %1802 = vmatprep.mubr.bf16.mxu1 %v949_v61 }
 0x1c3   :  { %1803 = vmatmul.mubr.bf16.vlgmr.msra.gmra.mxu1 %v950_v62 }
 0x1c5   :  { %v1760_v63 = vpop.f32.mrf.mxu1 }
 0x1c6   :  { %v815_v4 = vadd.f32 %v1760_v63, %v2139_v50 }
 0x1c7   :  { %v806_v0 = vpop.f32.mrf.mxu1 }
 0x1c8   :  { %v807_v2 = vadd.f32 %v2139_v50, %v806_v0  ;;  %v923_v10 = vmax.f32 %v815_v4, 0.0 }
 0x1c9   :  { %v1761_v1 = vpop.f32.mrf.mxu1 }
 0x1ca   :  { %v818_v3 = vadd.f32 %v1761_v1, %v2139_v50  ;;  %v921_v8 = vmax.f32 %v807_v2, 0.0 }
 0x1cb   :  { %v809_v5 = vpop.f32.mrf.mxu1 }
 0x1cc   :  { %v810_v6 = vadd.f32 %v2139_v50, %v809_v5  ;;  %v924_v7 = vmax.f32 %v818_v3, 0.0 }
 0x1ce   :  { %v922_v9 = vmax.f32 %v810_v6, 0.0  ;;  %v952_v12 = vpack.c.bf16 %v924_v7, %v923_v10 }
 0x1d0   :  { %v951_v11 = vpack.c.bf16 %v922_v9, %v921_v8 }
 0x1d2   :  { %1806 = vmatprep.mubr.bf16.mxu1 %v951_v11 }
 0x1d3   :  { %1807 = vmatmul.mubr.bf16.gmra.mxu1 %v952_v12 }
 0x1d5   :  { %v1764_v13 = vpop.f32.mrf.mxu1 }
 0x1d6   :  { %v831_v18 = vadd.f32 %v1764_v13, %v2139_v50 }
 0x1d7   :  { %v822_v14 = vpop.f32.mrf.mxu1 }
 0x1d8   :  { %v823_v16 = vadd.f32 %v2139_v50, %v822_v14  ;;  %v927_v24 = vmax.f32 %v831_v18, 0.0 }
 0x1d9   :  { %v1765_v15 = vpop.f32.mrf.mxu1 }
 0x1da   :  { %v834_v17 = vadd.f32 %v1765_v15, %v2139_v50  ;;  %v925_v22 = vmax.f32 %v823_v16, 0.0 }
 0x1db   :  { %v825_v19 = vpop.f32.mrf.mxu1 }
 0x1dc   :  { %v826_v20 = vadd.f32 %v2139_v50, %v825_v19  ;;  %v928_v21 = vmax.f32 %v834_v17, 0.0 }
 0x1de   :  { %v926_v23 = vmax.f32 %v826_v20, 0.0  ;;  %v954_v26 = vpack.c.bf16 %v928_v21, %v927_v24 }
 0x1e0   :  { %v953_v25 = vpack.c.bf16 %v926_v23, %v925_v22 }
 0x1e2   :  { %1810 = vmatprep.mubr.bf16.mxu1 %v953_v25 }
 0x1e3   :  { %1811 = vmatmul.mubr.bf16.gmra.mxu1 %v954_v26 }
 0x1e5   :  { %v1768_v27 = vpop.f32.mrf.mxu1 }
 0x1e6   :  { %v847_v32 = vadd.f32 %v1768_v27, %v2139_v50 }
 0x1e7   :  { %v838_v28 = vpop.f32.mrf.mxu1 }
 0x1e8   :  { %v839_v30 = vadd.f32 %v2139_v50, %v838_v28  ;;  %v931_v38 = vmax.f32 %v847_v32, 0.0 }
 0x1e9   :  { %v1769_v29 = vpop.f32.mrf.mxu1 }
 0x1ea   :  { %v850_v31 = vadd.f32 %v1769_v29, %v2139_v50  ;;  %v929_v36 = vmax.f32 %v839_v30, 0.0 }
 0x1eb   :  { %v841_v33 = vpop.f32.mrf.mxu1 }
 0x1ec   :  { %v842_v34 = vadd.f32 %v2139_v50, %v841_v33  ;;  %v932_v35 = vmax.f32 %v850_v31, 0.0 }
 0x1ee   :  { %v930_v37 = vmax.f32 %v842_v34, 0.0  ;;  %v956_v40 = vpack.c.bf16 %v932_v35, %v931_v38 }
 0x1f0   :  { %v955_v39 = vpack.c.bf16 %v930_v37, %v929_v36 }
 0x1f2   :  { %1814 = vmatprep.mubr.bf16.mxu1 %v955_v39 }
 0x1f3   :  { %1815 = vmatmul.mubr.bf16.gmra.mxu1 %v956_v40 }
 0x1f5   :  { %v1772_v41 = vpop.f32.mrf.mxu1 }
 0x1f6   :  { %v863_v46 = vadd.f32 %v1772_v41, %v2139_v50 }
 0x1f7   :  { %v854_v42 = vpop.f32.mrf.mxu1 }
 0x1f8   :  { %v855_v44 = vadd.f32 %v2139_v50, %v854_v42  ;;  %v935_v53 = vmax.f32 %v863_v46, 0.0 }
 0x1f9   :  { %v1773_v43 = vpop.f32.mrf.mxu1 }
 0x1fa   :  { %v866_v45 = vadd.f32 %v1773_v43, %v2139_v50  ;;  %v933_v51 = vmax.f32 %v855_v44, 0.0 }
 0x1fb   :  { %v857_v47 = vpop.f32.mrf.mxu1 }
 0x1fc   :  { %v858_v48 = vadd.f32 %v2139_v50, %v857_v47  ;;  %v936_v49 = vmax.f32 %v866_v45, 0.0 }
 0x1fe   :  { %v934_v52 = vmax.f32 %v858_v48, 0.0  ;;  %v958_v55 = vpack.c.bf16 %v936_v49, %v935_v53 }
 0x200   :  { %v957_v54 = vpack.c.bf16 %v934_v52, %v933_v51 }
 0x202   :  { %1818 = vmatprep.mubr.bf16.mxu1 %v957_v54 }
 0x203   :  { %1819 = vmatmul.mubr.bf16.gmra.mxu1 %v958_v55 }
 0x205   :  { %v1776_v56 = vpop.f32.mrf.mxu1 }
 0x206   :  { %v879_v61 = vadd.f32 %v1776_v56, %v2139_v50 }
 0x207   :  { %v870_v57 = vpop.f32.mrf.mxu1 }
 0x208   :  { %v871_v59 = vadd.f32 %v2139_v50, %v870_v57  ;;  %v939_v3 = vmax.f32 %v879_v61, 0.0 }
 0x209   :  { %v1777_v58 = vpop.f32.mrf.mxu1 }
 0x20a   :  { %v882_v60 = vadd.f32 %v1777_v58, %v2139_v50  ;;  %v937_v1 = vmax.f32 %v871_v59, 0.0 }
 0x20b   :  { %v873_v62 = vpop.f32.mrf.mxu1 }
 0x20c   :  { %v874_v63 = vadd.f32 %v2139_v50, %v873_v62  ;;  %v940_v0 = vmax.f32 %v882_v60, 0.0 }
 0x20e   :  { %v938_v2 = vmax.f32 %v874_v63, 0.0  ;;  %v960_v5 = vpack.c.bf16 %v940_v0, %v939_v3 }
 0x210   :  { %v959_v4 = vpack.c.bf16 %v938_v2, %v937_v1 }
 0x212   :  { %1822 = vmatprep.mubr.bf16.mxu1 %v959_v4 }
 0x213   :  { %1823 = vmatmul.mubr.bf16.gmra.mxu1 %v960_v5 }
 0x215   :  { %v1780_v6 = vpop.f32.mrf.mxu1 }
 0x216   :  { %v895_v11 = vadd.f32 %v1780_v6, %v2139_v50 }
 0x217   :  { %v886_v7 = vpop.f32.mrf.mxu1 }
 0x218   :  { %v887_v9 = vadd.f32 %v2139_v50, %v886_v7  ;;  %v943_v17 = vmax.f32 %v895_v11, 0.0 }
 0x219   :  { %v1781_v8 = vpop.f32.mrf.mxu1 }
 0x21a   :  { %v898_v10 = vadd.f32 %v1781_v8, %v2139_v50  ;;  %v941_v15 = vmax.f32 %v887_v9, 0.0 }
 0x21b   :  { %v889_v12 = vpop.f32.mrf.mxu1 }
 0x21c   :  { %v890_v13 = vadd.f32 %v2139_v50, %v889_v12  ;;  %v944_v14 = vmax.f32 %v898_v10, 0.0 }
 0x21e   :  { %v942_v16 = vmax.f32 %v890_v13, 0.0  ;;  %v962_v19 = vpack.c.bf16 %v944_v14, %v943_v17 }
 0x220   :  { %v961_v18 = vpack.c.bf16 %v942_v16, %v941_v15 }
 0x222   :  { %1826 = vmatprep.mubr.bf16.mxu1 %v961_v18 }
 0x223   :  { %1827 = vmatmul.mubr.bf16.gmra.mxu1 %v962_v19 }
 0x225   :  { %v1784_v20 = vpop.f32.mrf.mxu1 }
 0x226   :  { %v911_v25 = vadd.f32 %v1784_v20, %v2139_v50 }
 0x227   :  { %v902_v21 = vpop.f32.mrf.mxu1 }
 0x228   :  { %v903_v23 = vadd.f32 %v2139_v50, %v902_v21  ;;  %v947_v31 = vmax.f32 %v911_v25, 0.0 }
 0x229   :  { %v1785_v22 = vpop.f32.mrf.mxu1 }
 0x22a   :  { %v914_v24 = vadd.f32 %v1785_v22, %v2139_v50  ;;  %v945_v29 = vmax.f32 %v903_v23, 0.0 }
 0x22b   :  { %v905_v26 = vpop.f32.mrf.mxu1 }
 0x22c   :  { %v906_v27 = vadd.f32 %v2139_v50, %v905_v26  ;;  %v948_v28 = vmax.f32 %v914_v24, 0.0 }
 0x22e   :  { %v946_v30 = vmax.f32 %v906_v27, 0.0  ;;  %v964_v33 = vpack.c.bf16 %v948_v28, %v947_v31 }
 0x230   :  { %v963_v32 = vpack.c.bf16 %v946_v30, %v945_v29 }
 0x232   :  { %1830 = vmatprep.mubr.bf16.mxu1 %v963_v32 }
 0x233   :  { %1831 = vmatmul.mubr.bf16.gmra.mxu1 %v964_v33 }
 0x283   :  { %v1804_v34 = vpop.f32.mrf.mxu1 }
 0x285   :  { %v1063_v35 = vpop.f32.mrf.mxu1 }
 0x287   :  { %v1805_v36 = vpop.f32.mrf.mxu1 }
 0x288   :  { %v1491_v37 = vpack.c.bf16 %v1805_v36, %v1804_v34 }
 0x289   :  { %v1066_v38 = vpop.f32.mrf.mxu1 }
 0x28a   :  { %1563 = vst [vmem:[%s2226_s5 + $0x8] sm:$0xff] %v1491_v37   ;;  %v1486_v39 = vpack.c.bf16 %v1066_v38, %v1063_v35 }
 0x28c   :  { %1487 = vst [vmem:[%s2226_s5] sm:$0xff] %v1486_v39  }
 0x293   :  { %v1808_v50 = vpop.f32.mrf.mxu1 }
 0x295   :  { %v1079_v40 = vpop.f32.mrf.mxu1 }
 0x297   :  { %v1809_v41 = vpop.f32.mrf.mxu1 }
 0x298   :  { %v1501_v42 = vpack.c.bf16 %v1809_v41, %v1808_v50 }
 0x299   :  { %v1082_v43 = vpop.f32.mrf.mxu1 }
 0x29a   :  { %1565 = vst [vmem:[%s2226_s5 + $0x18] sm:$0xff] %v1501_v42   ;;  %v1496_v44 = vpack.c.bf16 %v1082_v43, %v1079_v40 }
 0x29c   :  { %1564 = vst [vmem:[%s2226_s5 + $0x10] sm:$0xff] %v1496_v44  }
 0x2a3   :  { %v1812_v45 = vpop.f32.mrf.mxu1 }
 0x2a5   :  { %v1095_v46 = vpop.f32.mrf.mxu1 }
 0x2a7   :  { %v1813_v47 = vpop.f32.mrf.mxu1 }
 0x2a8   :  { %v1511_v48 = vpack.c.bf16 %v1813_v47, %v1812_v45 }
 0x2a9   :  { %v1098_v49 = vpop.f32.mrf.mxu1 }
 0x2aa   :  { %1567 = vst [vmem:[%s2226_s5 + $0x28] sm:$0xff] %v1511_v48   ;;  %v1506_v51 = vpack.c.bf16 %v1098_v49, %v1095_v46 }
 0x2ac   :  { %1566 = vst [vmem:[%s2226_s5 + $0x20] sm:$0xff] %v1506_v51  }
 0x2b3   :  { %v1816_v52 = vpop.f32.mrf.mxu1 }
 0x2b5   :  { %v1111_v53 = vpop.f32.mrf.mxu1 }
 0x2b7   :  { %v1817_v54 = vpop.f32.mrf.mxu1 }
 0x2b8   :  { %v1521_v55 = vpack.c.bf16 %v1817_v54, %v1816_v52 }
 0x2b9   :  { %v1114_v56 = vpop.f32.mrf.mxu1 }
 0x2ba   :  { %1569 = vst [vmem:[%s2226_s5 + $0x38] sm:$0xff] %v1521_v55   ;;  %v1516_v57 = vpack.c.bf16 %v1114_v56, %v1111_v53 }
 0x2bc   :  { %1568 = vst [vmem:[%s2226_s5 + $0x30] sm:$0xff] %v1516_v57  }
 0x2c3   :  { %v1820_v58 = vpop.f32.mrf.mxu1 }
 0x2c5   :  { %v1127_v59 = vpop.f32.mrf.mxu1 }
 0x2c7   :  { %v1821_v60 = vpop.f32.mrf.mxu1 }
 0x2c8   :  { %v1531_v61 = vpack.c.bf16 %v1821_v60, %v1820_v58 }
 0x2c9   :  { %v1130_v62 = vpop.f32.mrf.mxu1 }
 0x2ca   :  { %1571 = vst [vmem:[%s2226_s5 + $0x48] sm:$0xff] %v1531_v61   ;;  %v1526_v63 = vpack.c.bf16 %v1130_v62, %v1127_v59 }
 0x2cc   :  { %1570 = vst [vmem:[%s2226_s5 + $0x40] sm:$0xff] %v1526_v63  }
 0x2d3   :  { %v1824_v0 = vpop.f32.mrf.mxu1 }
 0x2d5   :  { %v1143_v1 = vpop.f32.mrf.mxu1 }
 0x2d7   :  { %v1825_v2 = vpop.f32.mrf.mxu1 }
 0x2d8   :  { %v1541_v3 = vpack.c.bf16 %v1825_v2, %v1824_v0 }
 0x2d9   :  { %v1146_v4 = vpop.f32.mrf.mxu1 }
 0x2da   :  { %1573 = vst [vmem:[%s2226_s5 + $0x58] sm:$0xff] %v1541_v3   ;;  %v1536_v5 = vpack.c.bf16 %v1146_v4, %v1143_v1 }
 0x2dc   :  { %1572 = vst [vmem:[%s2226_s5 + $0x50] sm:$0xff] %v1536_v5  }
 0x2e3   :  { %v1828_v6 = vpop.f32.mrf.mxu1 }
 0x2e5   :  { %v1159_v7 = vpop.f32.mrf.mxu1 }
 0x2e7   :  { %v1829_v8 = vpop.f32.mrf.mxu1 }
 0x2e8   :  { %v1551_v9 = vpack.c.bf16 %v1829_v8, %v1828_v6 }
 0x2e9   :  { %v1162_v10 = vpop.f32.mrf.mxu1 }
 0x2ea   :  { %1575 = vst [vmem:[%s2226_s5 + $0x68] sm:$0xff] %v1551_v9   ;;  %v1546_v11 = vpack.c.bf16 %v1162_v10, %v1159_v7 }
 0x2ec   :  { %1574 = vst [vmem:[%s2226_s5 + $0x60] sm:$0xff] %v1546_v11  }
 0x2f3   :  { %v1832_v12 = vpop.f32.mrf.mxu1 }
 0x2f5   :  { %v1175_v13 = vpop.f32.mrf.mxu1 }
 0x2f7   :  { %v1833_v14 = vpop.f32.mrf.mxu1 }
 0x2f8   :  { %v1561_v15 = vpack.c.bf16 %v1833_v14, %v1832_v12 }
 0x2f9   :  { %v1178_v16 = vpop.f32.mrf.mxu1 }
 0x2fa   :  { %1577 = vst [vmem:[%s2226_s5 + $0x78] sm:$0xff] %v1561_v15   ;;  %v1556_v17 = vpack.c.bf16 %v1178_v16, %v1175_v13 }
 0x2fc   :  { %1576 = vst [vmem:[%s2226_s5 + $0x70] sm:$0xff] %v1556_v17  }

</bundles_post_ra>
